<compile_context>
chip_gen: v7x
topology: tpu7x:2x2x1
jax: 0.10.0
libtpu: 0.0.40
codegen_flags: <defaults>
</compile_context>

<pallas_src>
import jax
import jax.numpy as jnp
from jax import lax
from jax.experimental import pallas as pl
from jax.experimental.pallas import tpu as pltpu


def sent140_lstm_kernel(emb_ref, wih0_ref, b0_ref, wihr_ref, br_ref, whh_ref,
                        w1_ref, b1_ref, w2_ref, b2_ref,
                        out_ref,
                        seq_scr, xw_scr, h_scr, c_scr):
    # emb_ref : (T, BT, E)     time-major embedded tokens (one batch tile)
    # wih0_ref: (E, 4H)        layer-0 input->gates (gate cols ordered [i,f,o,g])
    # b0_ref  : (1, 4H)        layer-0 combined bias (b_ih + b_hh, reordered)
    # wihr_ref: (max(L-1,1), H, 4H)  layers >=1 input->gates
    # br_ref  : (max(L-1,1), 1, 4H)  layers >=1 combined bias
    # whh_ref : (L, H, 4H)     hidden->gates
    # w1_ref  : (H, H), b1_ref: (1, H)       classifier layer 1 (pre-transposed)
    # w2_ref  : (H, Cpad), b2_ref: (1, Cpad) classifier layer 2 (lane-padded to 128)
    # out_ref : (T, BT, Cpad)
    # seq_scr : (T*BT, H)      flat, tile-aligned per-layer output sequence
    # xw_scr  : (T*BT, 4H)     hoisted x @ W_ih + bias
    # h_scr/c_scr : (BT, H)
    T, BT, E = emb_ref.shape
    L, H, G = whh_ref.shape                         # G == 4*H
    Cpad = w2_ref.shape[1]

    # Constant lane mask: columns [0, 3H) -> sigmoid (i, f, o); [3H, 4H) -> tanh (g).
    # Built once (full (BT, G)) so nothing is re-broadcast inside the time loop.
    sig_mask = jnp.broadcast_to(
        lax.broadcasted_iota(jnp.int32, (1, G), 1) < 3 * H, (BT, G))

    def run_layer(whh_l):
        h_scr[...] = jnp.zeros_like(h_scr)
        c_scr[...] = jnp.zeros_like(c_scr)

        @pl.loop(0, T, unroll=True)                 # T static & small -> unroll
        def _(t, whh_l=whh_l):
            row = pl.multiple_of(t * BT, 8)         # aligned timestep slab
            h = h_scr[...]
            c = c_scr[...]
            gates = xw_scr[pl.ds(row, BT), :] + jnp.dot(
                h, whh_l, preferred_element_type=jnp.float32)      # (BT, 4H)
            act = jnp.where(sig_mask, jax.nn.sigmoid(gates), jnp.tanh(gates))
            i_g = act[:, 0:H]
            f_g = act[:, H:2 * H]
            o_g = act[:, 2 * H:3 * H]
            g_g = act[:, 3 * H:4 * H]
            c_new = f_g * c + i_g * g_g
            h_new = o_g * jnp.tanh(c_new)
            c_scr[...] = c_new
            h_scr[...] = h_new
            seq_scr[pl.ds(row, BT), :] = h_new      # becomes next layer's input

    # ---- layer 0: hoisted input projection straight from embeddings (E may != H)
    emb_flat = emb_ref[...].reshape(T * BT, E)
    xw_scr[...] = (jnp.dot(emb_flat, wih0_ref[...],
                           preferred_element_type=jnp.float32) + b0_ref[...])
    run_layer(whh_ref[0])

    # ---- layers 1..L-1 (static python loop, small)
    for l in range(1, L):
        xw_scr[...] = (jnp.dot(seq_scr[...], wihr_ref[l - 1],
                               preferred_element_type=jnp.float32) + br_ref[l - 1])
        run_layer(whh_ref[l])

    # ---- classifier on every timestep: Linear -> ReLU -> Linear (lane-dense output)
    hid = jnp.maximum(
        jnp.dot(seq_scr[...], w1_ref[...], preferred_element_type=jnp.float32)
        + b1_ref[...], 0.0)
    logits = (jnp.dot(hid, w2_ref[...], preferred_element_type=jnp.float32)
              + b2_ref[...])                        # (T*BT, Cpad)
    out_ref[...] = logits.reshape(T, BT, Cpad)


def _prep_params(w_ih, w_hh, b_ih, b_hh, w1, b1, w2, b2, lane=128):
    """Reorder gates to [i,f,o,g], pre-transpose weights, lane-pad the classifier."""
    L = len(w_ih)
    H = w_hh[0].shape[1]
    # PyTorch packs gate rows as [i | f | g | o]; kernel wants [i | f | o | g].
    perm = jnp.concatenate([jnp.arange(0, H), jnp.arange(H, 2 * H),
                            jnp.arange(3 * H, 4 * H), jnp.arange(2 * H, 3 * H)])
    wih0 = jnp.asarray(w_ih[0])[perm].T                                   # (E, 4H)
    b0 = (jnp.asarray(b_ih[0]) + jnp.asarray(b_hh[0]))[perm][None, :]     # (1, 4H)
    whh = jnp.stack([jnp.asarray(w_hh[l])[perm].T for l in range(L)])     # (L, H, 4H)
    if L > 1:
        wihr = jnp.stack([jnp.asarray(w_ih[l])[perm].T for l in range(1, L)])
        br = jnp.stack([(jnp.asarray(b_ih[l]) + jnp.asarray(b_hh[l]))[perm]
                        for l in range(1, L)])[:, None, :]
    else:  # unused dummies (kernel never indexes them when L == 1)
        wihr = jnp.zeros((1, H, 4 * H), jnp.float32)
        br = jnp.zeros((1, 1, 4 * H), jnp.float32)
    w1_t = jnp.asarray(w1).T                                              # (H, H)
    b1_r = jnp.asarray(b1)[None, :]                                       # (1, H)
    C = w2.shape[0]
    Cpad = ((C + lane - 1) // lane) * lane
    Cpad = max(Cpad, lane)
    w2_t = jnp.zeros((H, Cpad), jnp.float32).at[:, :C].set(jnp.asarray(w2).T)
    b2_r = jnp.zeros((1, Cpad), jnp.float32).at[:, :C].set(jnp.asarray(b2))
    return wih0, b0, wihr, br, whh, w1_t, b1_r, w2_t, b2_r, C, Cpad


def sent140_lstm_forward(tokens, glove_emb, lstm_params, clf_params, batch_tile=8):
    """tokens: (B, T) int32 token ids.  Returns (B, T, num_classes) float32."""
    w_ih, w_hh, b_ih, b_hh = lstm_params
    w1, b1, w2, b2 = clf_params
    B, T = tokens.shape
    E = glove_emb.shape[1]
    L = len(w_ih)
    H = w_hh[0].shape[1]

    (wih0, b0, wihr, br, whh,
     w1_t, b1_r, w2_t, b2_r, C, Cpad) = _prep_params(w_ih, w_hh, b_ih, b_hh,
                                                     w1, b1, w2, b2)

    BT = batch_tile                                   # sublane-aligned batch tile
    Bpad = ((B + BT - 1) // BT) * BT

    # Embedding lookup directly in time-major order (padding_idx only affects grads
    # in torch; forward is a plain gather).  Zero-pad batch to the tile size.
    emb_tbe = glove_emb[tokens.T]                     # (T, B, E)
    emb_tbe = jnp.pad(emb_tbe, ((0, 0), (0, Bpad - B), (0, 0)))

    G = 4 * H
    out_tbc = pl.pallas_call(
        sent140_lstm_kernel,
        out_shape=jax.ShapeDtypeStruct((T, Bpad, Cpad), jnp.float32),
        grid=(Bpad // BT,),
        in_specs=[
            pl.BlockSpec((T, BT, E), lambda b: (0, b, 0)),     # emb (batch-tiled)
            pl.BlockSpec((E, G), lambda b: (0, 0)),            # wih0
            pl.BlockSpec((1, G), lambda b: (0, 0)),            # b0
            pl.BlockSpec(wihr.shape, lambda b: (0, 0, 0)),     # wihr
            pl.BlockSpec(br.shape, lambda b: (0, 0, 0)),       # br
            pl.BlockSpec((L, H, G), lambda b: (0, 0, 0)),      # whh
            pl.BlockSpec((H, H), lambda b: (0, 0)),            # w1
            pl.BlockSpec((1, H), lambda b: (0, 0)),            # b1
            pl.BlockSpec((H, Cpad), lambda b: (0, 0)),         # w2 (lane-padded)
            pl.BlockSpec((1, Cpad), lambda b: (0, 0)),         # b2 (lane-padded)
        ],
        out_specs=pl.BlockSpec((T, BT, Cpad), lambda b: (0, b, 0)),
        scratch_shapes=[
            pltpu.VMEM((T * BT, H), jnp.float32),   # flat per-layer output sequence
            pltpu.VMEM((T * BT, G), jnp.float32),   # hoisted x @ W_ih + bias
            pltpu.VMEM((BT, H), jnp.float32),       # h
            pltpu.VMEM((BT, H), jnp.float32),       # c
        ],
        compiler_params=pltpu.CompilerParams(
            dimension_semantics=("parallel",)),
    )(emb_tbe, wih0, b0, wihr, br, whh, w1_t, b1_r, w2_t, b2_r)

    # strip batch/class padding, back to PyTorch's batch-first layout
    return jnp.transpose(out_tbc[:, :B, :C], (1, 0, 2))       # (B, T, C)


def reference_forward(tokens, glove_emb, lstm_params, clf_params):
    """Pure-JAX reference mirroring torch.nn.LSTM / Linear semantics (eval mode)."""
    w_ih, w_hh, b_ih, b_hh = lstm_params
    w1, b1, w2, b2 = clf_params
    B, T = tokens.shape
    L = len(w_ih)
    H = w_hh[0].shape[1]
    x = glove_emb[tokens]                            # (B, T, E)
    for l in range(L):
        h = jnp.zeros((B, H), jnp.float32)
        c = jnp.zeros((B, H), jnp.float32)
        outs = []
        for t in range(T):
            gates = x[:, t] @ w_ih[l].T + b_ih[l] + h @ w_hh[l].T + b_hh[l]
            i = jax.nn.sigmoid(gates[:, 0:H])
            f = jax.nn.sigmoid(gates[:, H:2 * H])
            g = jnp.tanh(gates[:, 2 * H:3 * H])
            o = jax.nn.sigmoid(gates[:, 3 * H:4 * H])
            c = f * c + i * g
            h = o * jnp.tanh(c)
            outs.append(h)
        x = jnp.stack(outs, axis=1)                  # (B, T, H)
    hid = jnp.maximum(x @ w1.T + b1, 0.0)
    return hid @ w2.T + b2


if __name__ == "__main__":
    VOCAB = 64
    EMB = 32          # embedding_size
    HID = 32          # hidden_size
    LAYERS = 2        # num_layers
    CLASSES = 2       # num_classes
    B, T = 2, 8

    key = jax.random.PRNGKey(0)
    ks = jax.random.split(key, 16)
    scale = 1.0 / jnp.sqrt(HID)

    def u(k, shape):
        return jax.random.uniform(k, shape, jnp.float32, -scale, scale)

    glove_emb = jax.random.normal(ks[0], (VOCAB, EMB), jnp.float32)
    glove_emb = glove_emb.at[0].set(0.0)             # padding row (by convention)

    # PyTorch-layout LSTM params: per layer W_ih (4H, in), W_hh (4H, H), biases (4H,)
    w_ih, w_hh, b_ih, b_hh = [], [], [], []
    ki = 1
    for l in range(LAYERS):
        in_dim = EMB if l == 0 else HID
        w_ih.append(u(ks[ki], (4 * HID, in_dim))); ki += 1
        w_hh.append(u(ks[ki], (4 * HID, HID))); ki += 1
        b_ih.append(u(ks[ki], (4 * HID,))); ki += 1
        b_hh.append(u(ks[ki], (4 * HID,))); ki += 1

    w1 = u(ks[ki], (HID, HID)); ki += 1
    b1 = u(ks[ki], (HID,)); ki += 1
    w2 = u(ks[ki], (CLASSES, HID)); ki += 1
    b2 = u(ks[ki], (CLASSES,)); ki += 1

    tokens = jax.random.randint(ks[ki], (B, T), 0, VOCAB, jnp.int32)

    lstm_params = (w_ih, w_hh, b_ih, b_hh)
    clf_params = (w1, b1, w2, b2)

    out = sent140_lstm_forward(tokens, glove_emb, lstm_params, clf_params)
    out = jax.block_until_ready(out)

    ref = reference_forward(tokens, glove_emb, lstm_params, clf_params)
    assert out.shape == (B, T, CLASSES)
    assert jnp.allclose(out, ref, atol=1e-4, rtol=1e-4), "mismatch vs pure-JAX reference"

    print("KERNEL_OK")
</pallas_src>

<mosaic_0001>
module attributes {stable_mosaic.version = 11 : i64} {
  func.func @sent140_lstm_kernel(%arg0: i32, %arg1: memref<8x8x32xf32, #tpu.memory_space<vmem>>, %arg2: memref<32x128xf32, #tpu.memory_space<vmem>>, %arg3: memref<1x128xf32, #tpu.memory_space<vmem>>, %arg4: memref<1x32x128xf32, #tpu.memory_space<vmem>>, %arg5: memref<1x1x128xf32, #tpu.memory_space<vmem>>, %arg6: memref<2x32x128xf32, #tpu.memory_space<vmem>>, %arg7: memref<32x32xf32, #tpu.memory_space<vmem>>, %arg8: memref<1x32xf32, #tpu.memory_space<vmem>>, %arg9: memref<32x128xf32, #tpu.memory_space<vmem>>, %arg10: memref<1x128xf32, #tpu.memory_space<vmem>>, %arg11: memref<8x8x128xf32, #tpu.memory_space<vmem>>, %arg12: memref<64x32xf32, #tpu.memory_space<vmem>>, %arg13: memref<64x128xf32, #tpu.memory_space<vmem>>, %arg14: memref<8x32xf32, #tpu.memory_space<vmem>>, %arg15: memref<8x32xf32, #tpu.memory_space<vmem>>) attributes {dimension_semantics = [#tpu.dimension_semantics<parallel>], iteration_bounds = array<i64: 1>, scalar_prefetch = 0 : i64, scratch_operands = 4 : i64, tpu.core_type = #tpu.core_type<tc>, window_params = [{transform_indices = @transform_0, window_bounds = array<i64: 8, 8, 32>}, {pipeline_mode = #tpu.pipeline_mode<synchronous>, transform_indices = @transform_1, window_bounds = array<i64: 32, 128>}, {pipeline_mode = #tpu.pipeline_mode<synchronous>, transform_indices = @transform_2, window_bounds = array<i64: 1, 128>}, {pipeline_mode = #tpu.pipeline_mode<synchronous>, transform_indices = @transform_3, window_bounds = array<i64: 1, 32, 128>}, {pipeline_mode = #tpu.pipeline_mode<synchronous>, transform_indices = @transform_4, window_bounds = array<i64: 1, 1, 128>}, {pipeline_mode = #tpu.pipeline_mode<synchronous>, transform_indices = @transform_5, window_bounds = array<i64: 2, 32, 128>}, {pipeline_mode = #tpu.pipeline_mode<synchronous>, transform_indices = @transform_6, window_bounds = array<i64: 32, 32>}, {pipeline_mode = #tpu.pipeline_mode<synchronous>, transform_indices = @transform_7, window_bounds = array<i64: 1, 32>}, {pipeline_mode = #tpu.pipeline_mode<synchronous>, transform_indices = @transform_8, window_bounds = array<i64: 32, 128>}, {pipeline_mode = #tpu.pipeline_mode<synchronous>, transform_indices = @transform_9, window_bounds = array<i64: 1, 128>}, {transform_indices = @transform_10, window_bounds = array<i64: 8, 8, 128>}]} {
    %0 = tpu.iota {dimensions = array<i32: 1>} : vector<1x128xi32>
    %c96_i32 = arith.constant 96 : i32
    %1 = vector.broadcast %c96_i32 : i32 to vector<1x128xi32>
    %2 = arith.cmpi slt, %0, %1 : vector<1x128xi32>
    %3 = vector.shape_cast %2 : vector<1x128xi1> to vector<1x128xi1>
    %4 = vector.broadcast %3 : vector<1x128xi1> to vector<8x128xi1>
    %c0 = arith.constant 0 : index
    %c0_0 = arith.constant 0 : index
    %c0_1 = arith.constant 0 : index
    %5 = vector.load %arg1[%c0, %c0_0, %c0_1] : memref<8x8x32xf32, #tpu.memory_space<vmem>>, vector<8x8x32xf32>
    %6 = vector.shape_cast %5 : vector<8x8x32xf32> to vector<64x32xf32>
    %c0_2 = arith.constant 0 : index
    %c0_3 = arith.constant 0 : index
    %7 = vector.load %arg2[%c0_2, %c0_3] : memref<32x128xf32, #tpu.memory_space<vmem>>, vector<32x128xf32>
    %cst = arith.constant dense<0.000000e+00> : vector<64x128xf32>
    %8 = tpu.matmul %6, %7, %cst {dimension_numbers = #tpu.dot_dimension_numbers<[1], [0], [0], [1], [0, 0, 1, 1], [], []>} : vector<64x32xf32>, vector<32x128xf32>, vector<64x128xf32> -> vector<64x128xf32>
    %c0_4 = arith.constant 0 : index
    %c0_5 = arith.constant 0 : index
    %9 = vector.load %arg3[%c0_4, %c0_5] : memref<1x128xf32, #tpu.memory_space<vmem>>, vector<1x128xf32>
    %10 = vector.broadcast %9 : vector<1x128xf32> to vector<64x128xf32>
    %11 = arith.addf %8, %10 : vector<64x128xf32>
    %c0_6 = arith.constant 0 : index
    %c0_7 = arith.constant 0 : index
    %12 = vector.load %arg13[%c0_6, %c0_7] : memref<64x128xf32, #tpu.memory_space<vmem>>, vector<64x128xf32>
    tpu.vector_store %arg13[%c0_6, %c0_7], %11 {strides = array<i32>} : memref<64x128xf32, #tpu.memory_space<vmem>>, vector<64x128xf32>,
    %c0_8 = arith.constant 0 : index
    %c0_9 = arith.constant 0 : index
    %c0_10 = arith.constant 0 : index
    %13 = vector.load %arg6[%c0_8, %c0_9, %c0_10] : memref<2x32x128xf32, #tpu.memory_space<vmem>>, vector<1x32x128xf32>
    %14 = vector.shape_cast %13 : vector<1x32x128xf32> to vector<32x128xf32>
    %cst_11 = arith.constant 0.000000e+00 : f32
    %15 = vector.broadcast %cst_11 : f32 to vector<8x32xf32>
    %c0_12 = arith.constant 0 : index
    %c0_13 = arith.constant 0 : index
    %16 = vector.load %arg14[%c0_12, %c0_13] : memref<8x32xf32, #tpu.memory_space<vmem>>, vector<8x32xf32>
    tpu.vector_store %arg14[%c0_12, %c0_13], %15 {strides = array<i32>} : memref<8x32xf32, #tpu.memory_space<vmem>>, vector<8x32xf32>,
    %cst_14 = arith.constant 0.000000e+00 : f32
    %17 = vector.broadcast %cst_14 : f32 to vector<8x32xf32>
    %c0_15 = arith.constant 0 : index
    %c0_16 = arith.constant 0 : index
    %18 = vector.load %arg15[%c0_15, %c0_16] : memref<8x32xf32, #tpu.memory_space<vmem>>, vector<8x32xf32>
    tpu.vector_store %arg15[%c0_15, %c0_16], %17 {strides = array<i32>} : memref<8x32xf32, #tpu.memory_space<vmem>>, vector<8x32xf32>,
    %c0_i32 = arith.constant 0 : i32
    %c1_i32 = arith.constant 1 : i32
    %19 = arith.muli %c0_i32, %c1_i32 : i32
    %c0_i32_17 = arith.constant 0 : i32
    %20 = arith.addi %c0_i32_17, %19 : i32
    %c8_i32 = arith.constant 8 : i32
    %21 = arith.muli %20, %c8_i32 : i32
    %22 = tpu.assume_multiple %21, 8 : i32
    %c0_18 = arith.constant 0 : index
    %c0_19 = arith.constant 0 : index
    %23 = vector.load %arg14[%c0_18, %c0_19] : memref<8x32xf32, #tpu.memory_space<vmem>>, vector<8x32xf32>
    %c0_20 = arith.constant 0 : index
    %c0_21 = arith.constant 0 : index
    %24 = vector.load %arg15[%c0_20, %c0_21] : memref<8x32xf32, #tpu.memory_space<vmem>>, vector<8x32xf32>
    %25 = arith.index_cast %22 : i32 to index
    %c0_22 = arith.constant 0 : index
    %26 = vector.load %arg13[%25, %c0_22] : memref<64x128xf32, #tpu.memory_space<vmem>>, vector<8x128xf32>
    %cst_23 = arith.constant dense<0.000000e+00> : vector<8x128xf32>
    %27 = tpu.matmul %23, %14, %cst_23 {dimension_numbers = #tpu.dot_dimension_numbers<[1], [0], [0], [1], [0, 0, 1, 1], [], []>} : vector<8x32xf32>, vector<32x128xf32>, vector<8x128xf32> -> vector<8x128xf32>
    %28 = arith.addf %26, %27 : vector<8x128xf32>
    %29 = arith.negf %28 : vector<8x128xf32>
    %30 = math.exp %29 : vector<8x128xf32>
    %cst_24 = arith.constant 1.000000e+00 : f32
    %31 = vector.broadcast %cst_24 : f32 to vector<8x128xf32>
    %32 = arith.addf %31, %30 : vector<8x128xf32>
    %33 = arith.divf %31, %32 : vector<8x128xf32>
    %34 = math.tanh %28 : vector<8x128xf32>
    %35 = arith.select %4, %33, %34 : vector<8x128xi1>, vector<8x128xf32>
    %36 = vector.extract_strided_slice %35 {offsets = [0, 0], sizes = [8, 32], strides = [1, 1]} : vector<8x128xf32> to vector<8x32xf32>
    %37 = vector.extract_strided_slice %35 {offsets = [0, 32], sizes = [8, 32], strides = [1, 1]} : vector<8x128xf32> to vector<8x32xf32>
    %38 = vector.extract_strided_slice %35 {offsets = [0, 64], sizes = [8, 32], strides = [1, 1]} : vector<8x128xf32> to vector<8x32xf32>
    %39 = vector.extract_strided_slice %35 {offsets = [0, 96], sizes = [8, 32], strides = [1, 1]} : vector<8x128xf32> to vector<8x32xf32>
    %40 = arith.mulf %37, %24 : vector<8x32xf32>
    %41 = arith.mulf %36, %39 : vector<8x32xf32>
    %42 = arith.addf %40, %41 : vector<8x32xf32>
    %43 = math.tanh %42 : vector<8x32xf32>
    %44 = arith.mulf %38, %43 : vector<8x32xf32>
    %c0_25 = arith.constant 0 : index
    %c0_26 = arith.constant 0 : index
    %45 = vector.load %arg15[%c0_25, %c0_26] : memref<8x32xf32, #tpu.memory_space<vmem>>, vector<8x32xf32>
    tpu.vector_store %arg15[%c0_25, %c0_26], %42 {strides = array<i32>} : memref<8x32xf32, #tpu.memory_space<vmem>>, vector<8x32xf32>,
    %c0_27 = arith.constant 0 : index
    %c0_28 = arith.constant 0 : index
    %46 = vector.load %arg14[%c0_27, %c0_28] : memref<8x32xf32, #tpu.memory_space<vmem>>, vector<8x32xf32>
    tpu.vector_store %arg14[%c0_27, %c0_28], %44 {strides = array<i32>} : memref<8x32xf32, #tpu.memory_space<vmem>>, vector<8x32xf32>,
    %47 = arith.index_cast %22 : i32 to index
    %c0_29 = arith.constant 0 : index
    %48 = vector.load %arg12[%47, %c0_29] : memref<64x32xf32, #tpu.memory_space<vmem>>, vector<8x32xf32>
    tpu.vector_store %arg12[%47, %c0_29], %44 {strides = array<i32>} : memref<64x32xf32, #tpu.memory_space<vmem>>, vector<8x32xf32>,
    %c1_i32_30 = arith.constant 1 : i32
    %c1_i32_31 = arith.constant 1 : i32
    %49 = arith.muli %c1_i32_30, %c1_i32_31 : i32
    %c0_i32_32 = arith.constant 0 : i32
    %50 = arith.addi %c0_i32_32, %49 : i32
    %c8_i32_33 = arith.constant 8 : i32
    %51 = arith.muli %50, %c8_i32_33 : i32
    %52 = tpu.assume_multiple %51, 8 : i32
    %c0_34 = arith.constant 0 : index
    %c0_35 = arith.constant 0 : index
    %53 = vector.load %arg14[%c0_34, %c0_35] : memref<8x32xf32, #tpu.memory_space<vmem>>, vector<8x32xf32>
    %c0_36 = arith.constant 0 : index
    %c0_37 = arith.constant 0 : index
    %54 = vector.load %arg15[%c0_36, %c0_37] : memref<8x32xf32, #tpu.memory_space<vmem>>, vector<8x32xf32>
    %55 = arith.index_cast %52 : i32 to index
    %c0_38 = arith.constant 0 : index
    %56 = vector.load %arg13[%55, %c0_38] : memref<64x128xf32, #tpu.memory_space<vmem>>, vector<8x128xf32>
    %cst_39 = arith.constant dense<0.000000e+00> : vector<8x128xf32>
    %57 = tpu.matmul %53, %14, %cst_39 {dimension_numbers = #tpu.dot_dimension_numbers<[1], [0], [0], [1], [0, 0, 1, 1], [], []>} : vector<8x32xf32>, vector<32x128xf32>, vector<8x128xf32> -> vector<8x128xf32>
    %58 = arith.addf %56, %57 : vector<8x128xf32>
    %59 = arith.negf %58 : vector<8x128xf32>
    %60 = math.exp %59 : vector<8x128xf32>
    %cst_40 = arith.constant 1.000000e+00 : f32
    %61 = vector.broadcast %cst_40 : f32 to vector<8x128xf32>
    %62 = arith.addf %61, %60 : vector<8x128xf32>
    %63 = arith.divf %61, %62 : vector<8x128xf32>
    %64 = math.tanh %58 : vector<8x128xf32>
    %65 = arith.select %4, %63, %64 : vector<8x128xi1>, vector<8x128xf32>
    %66 = vector.extract_strided_slice %65 {offsets = [0, 0], sizes = [8, 32], strides = [1, 1]} : vector<8x128xf32> to vector<8x32xf32>
    %67 = vector.extract_strided_slice %65 {offsets = [0, 32], sizes = [8, 32], strides = [1, 1]} : vector<8x128xf32> to vector<8x32xf32>
    %68 = vector.extract_strided_slice %65 {offsets = [0, 64], sizes = [8, 32], strides = [1, 1]} : vector<8x128xf32> to vector<8x32xf32>
    %69 = vector.extract_strided_slice %65 {offsets = [0, 96], sizes = [8, 32], strides = [1, 1]} : vector<8x128xf32> to vector<8x32xf32>
    %70 = arith.mulf %67, %54 : vector<8x32xf32>
    %71 = arith.mulf %66, %69 : vector<8x32xf32>
    %72 = arith.addf %70, %71 : vector<8x32xf32>
    %73 = math.tanh %72 : vector<8x32xf32>
    %74 = arith.mulf %68, %73 : vector<8x32xf32>
    %c0_41 = arith.constant 0 : index
    %c0_42 = arith.constant 0 : index
    %75 = vector.load %arg15[%c0_41, %c0_42] : memref<8x32xf32, #tpu.memory_space<vmem>>, vector<8x32xf32>
    tpu.vector_store %arg15[%c0_41, %c0_42], %72 {strides = array<i32>} : memref<8x32xf32, #tpu.memory_space<vmem>>, vector<8x32xf32>,
    %c0_43 = arith.constant 0 : index
    %c0_44 = arith.constant 0 : index
    %76 = vector.load %arg14[%c0_43, %c0_44] : memref<8x32xf32, #tpu.memory_space<vmem>>, vector<8x32xf32>
    tpu.vector_store %arg14[%c0_43, %c0_44], %74 {strides = array<i32>} : memref<8x32xf32, #tpu.memory_space<vmem>>, vector<8x32xf32>,
    %77 = arith.index_cast %52 : i32 to index
    %c0_45 = arith.constant 0 : index
    %78 = vector.load %arg12[%77, %c0_45] : memref<64x32xf32, #tpu.memory_space<vmem>>, vector<8x32xf32>
    tpu.vector_store %arg12[%77, %c0_45], %74 {strides = array<i32>} : memref<64x32xf32, #tpu.memory_space<vmem>>, vector<8x32xf32>,
    %c2_i32 = arith.constant 2 : i32
    %c1_i32_46 = arith.constant 1 : i32
    %79 = arith.muli %c2_i32, %c1_i32_46 : i32
    %c0_i32_47 = arith.constant 0 : i32
    %80 = arith.addi %c0_i32_47, %79 : i32
    %c8_i32_48 = arith.constant 8 : i32
    %81 = arith.muli %80, %c8_i32_48 : i32
    %82 = tpu.assume_multiple %81, 8 : i32
    %c0_49 = arith.constant 0 : index
    %c0_50 = arith.constant 0 : index
    %83 = vector.load %arg14[%c0_49, %c0_50] : memref<8x32xf32, #tpu.memory_space<vmem>>, vector<8x32xf32>
    %c0_51 = arith.constant 0 : index
    %c0_52 = arith.constant 0 : index
    %84 = vector.load %arg15[%c0_51, %c0_52] : memref<8x32xf32, #tpu.memory_space<vmem>>, vector<8x32xf32>
    %85 = arith.index_cast %82 : i32 to index
    %c0_53 = arith.constant 0 : index
    %86 = vector.load %arg13[%85, %c0_53] : memref<64x128xf32, #tpu.memory_space<vmem>>, vector<8x128xf32>
    %cst_54 = arith.constant dense<0.000000e+00> : vector<8x128xf32>
    %87 = tpu.matmul %83, %14, %cst_54 {dimension_numbers = #tpu.dot_dimension_numbers<[1], [0], [0], [1], [0, 0, 1, 1], [], []>} : vector<8x32xf32>, vector<32x128xf32>, vector<8x128xf32> -> vector<8x128xf32>
    %88 = arith.addf %86, %87 : vector<8x128xf32>
    %89 = arith.negf %88 : vector<8x128xf32>
    %90 = math.exp %89 : vector<8x128xf32>
    %cst_55 = arith.constant 1.000000e+00 : f32
    %91 = vector.broadcast %cst_55 : f32 to vector<8x128xf32>
    %92 = arith.addf %91, %90 : vector<8x128xf32>
    %93 = arith.divf %91, %92 : vector<8x128xf32>
    %94 = math.tanh %88 : vector<8x128xf32>
    %95 = arith.select %4, %93, %94 : vector<8x128xi1>, vector<8x128xf32>
    %96 = vector.extract_strided_slice %95 {offsets = [0, 0], sizes = [8, 32], strides = [1, 1]} : vector<8x128xf32> to vector<8x32xf32>
    %97 = vector.extract_strided_slice %95 {offsets = [0, 32], sizes = [8, 32], strides = [1, 1]} : vector<8x128xf32> to vector<8x32xf32>
    %98 = vector.extract_strided_slice %95 {offsets = [0, 64], sizes = [8, 32], strides = [1, 1]} : vector<8x128xf32> to vector<8x32xf32>
    %99 = vector.extract_strided_slice %95 {offsets = [0, 96], sizes = [8, 32], strides = [1, 1]} : vector<8x128xf32> to vector<8x32xf32>
    %100 = arith.mulf %97, %84 : vector<8x32xf32>
    %101 = arith.mulf %96, %99 : vector<8x32xf32>
    %102 = arith.addf %100, %101 : vector<8x32xf32>
    %103 = math.tanh %102 : vector<8x32xf32>
    %104 = arith.mulf %98, %103 : vector<8x32xf32>
    %c0_56 = arith.constant 0 : index
    %c0_57 = arith.constant 0 : index
    %105 = vector.load %arg15[%c0_56, %c0_57] : memref<8x32xf32, #tpu.memory_space<vmem>>, vector<8x32xf32>
    tpu.vector_store %arg15[%c0_56, %c0_57], %102 {strides = array<i32>} : memref<8x32xf32, #tpu.memory_space<vmem>>, vector<8x32xf32>,
    %c0_58 = arith.constant 0 : index
    %c0_59 = arith.constant 0 : index
    %106 = vector.load %arg14[%c0_58, %c0_59] : memref<8x32xf32, #tpu.memory_space<vmem>>, vector<8x32xf32>
    tpu.vector_store %arg14[%c0_58, %c0_59], %104 {strides = array<i32>} : memref<8x32xf32, #tpu.memory_space<vmem>>, vector<8x32xf32>,
    %107 = arith.index_cast %82 : i32 to index
    %c0_60 = arith.constant 0 : index
    %108 = vector.load %arg12[%107, %c0_60] : memref<64x32xf32, #tpu.memory_space<vmem>>, vector<8x32xf32>
    tpu.vector_store %arg12[%107, %c0_60], %104 {strides = array<i32>} : memref<64x32xf32, #tpu.memory_space<vmem>>, vector<8x32xf32>,
    %c3_i32 = arith.constant 3 : i32
    %c1_i32_61 = arith.constant 1 : i32
    %109 = arith.muli %c3_i32, %c1_i32_61 : i32
    %c0_i32_62 = arith.constant 0 : i32
    %110 = arith.addi %c0_i32_62, %109 : i32
    %c8_i32_63 = arith.constant 8 : i32
    %111 = arith.muli %110, %c8_i32_63 : i32
    %112 = tpu.assume_multiple %111, 8 : i32
    %c0_64 = arith.constant 0 : index
    %c0_65 = arith.constant 0 : index
    %113 = vector.load %arg14[%c0_64, %c0_65] : memref<8x32xf32, #tpu.memory_space<vmem>>, vector<8x32xf32>
    %c0_66 = arith.constant 0 : index
    %c0_67 = arith.constant 0 : index
    %114 = vector.load %arg15[%c0_66, %c0_67] : memref<8x32xf32, #tpu.memory_space<vmem>>, vector<8x32xf32>
    %115 = arith.index_cast %112 : i32 to index
    %c0_68 = arith.constant 0 : index
    %116 = vector.load %arg13[%115, %c0_68] : memref<64x128xf32, #tpu.memory_space<vmem>>, vector<8x128xf32>
    %cst_69 = arith.constant dense<0.000000e+00> : vector<8x128xf32>
    %117 = tpu.matmul %113, %14, %cst_69 {dimension_numbers = #tpu.dot_dimension_numbers<[1], [0], [0], [1], [0, 0, 1, 1], [], []>} : vector<8x32xf32>, vector<32x128xf32>, vector<8x128xf32> -> vector<8x128xf32>
    %118 = arith.addf %116, %117 : vector<8x128xf32>
    %119 = arith.negf %118 : vector<8x128xf32>
    %120 = math.exp %119 : vector<8x128xf32>
    %cst_70 = arith.constant 1.000000e+00 : f32
    %121 = vector.broadcast %cst_70 : f32 to vector<8x128xf32>
    %122 = arith.addf %121, %120 : vector<8x128xf32>
    %123 = arith.divf %121, %122 : vector<8x128xf32>
    %124 = math.tanh %118 : vector<8x128xf32>
    %125 = arith.select %4, %123, %124 : vector<8x128xi1>, vector<8x128xf32>
    %126 = vector.extract_strided_slice %125 {offsets = [0, 0], sizes = [8, 32], strides = [1, 1]} : vector<8x128xf32> to vector<8x32xf32>
    %127 = vector.extract_strided_slice %125 {offsets = [0, 32], sizes = [8, 32], strides = [1, 1]} : vector<8x128xf32> to vector<8x32xf32>
    %128 = vector.extract_strided_slice %125 {offsets = [0, 64], sizes = [8, 32], strides = [1, 1]} : vector<8x128xf32> to vector<8x32xf32>
    %129 = vector.extract_strided_slice %125 {offsets = [0, 96], sizes = [8, 32], strides = [1, 1]} : vector<8x128xf32> to vector<8x32xf32>
    %130 = arith.mulf %127, %114 : vector<8x32xf32>
    %131 = arith.mulf %126, %129 : vector<8x32xf32>
    %132 = arith.addf %130, %131 : vector<8x32xf32>
    %133 = math.tanh %132 : vector<8x32xf32>
    %134 = arith.mulf %128, %133 : vector<8x32xf32>
    %c0_71 = arith.constant 0 : index
    %c0_72 = arith.constant 0 : index
    %135 = vector.load %arg15[%c0_71, %c0_72] : memref<8x32xf32, #tpu.memory_space<vmem>>, vector<8x32xf32>
    tpu.vector_store %arg15[%c0_71, %c0_72], %132 {strides = array<i32>} : memref<8x32xf32, #tpu.memory_space<vmem>>, vector<8x32xf32>,
    %c0_73 = arith.constant 0 : index
    %c0_74 = arith.constant 0 : index
    %136 = vector.load %arg14[%c0_73, %c0_74] : memref<8x32xf32, #tpu.memory_space<vmem>>, vector<8x32xf32>
    tpu.vector_store %arg14[%c0_73, %c0_74], %134 {strides = array<i32>} : memref<8x32xf32, #tpu.memory_space<vmem>>, vector<8x32xf32>,
    %137 = arith.index_cast %112 : i32 to index
    %c0_75 = arith.constant 0 : index
    %138 = vector.load %arg12[%137, %c0_75] : memref<64x32xf32, #tpu.memory_space<vmem>>, vector<8x32xf32>
    tpu.vector_store %arg12[%137, %c0_75], %134 {strides = array<i32>} : memref<64x32xf32, #tpu.memory_space<vmem>>, vector<8x32xf32>,
    %c4_i32 = arith.constant 4 : i32
    %c1_i32_76 = arith.constant 1 : i32
    %139 = arith.muli %c4_i32, %c1_i32_76 : i32
    %c0_i32_77 = arith.constant 0 : i32
    %140 = arith.addi %c0_i32_77, %139 : i32
    %c8_i32_78 = arith.constant 8 : i32
    %141 = arith.muli %140, %c8_i32_78 : i32
    %142 = tpu.assume_multiple %141, 8 : i32
    %c0_79 = arith.constant 0 : index
    %c0_80 = arith.constant 0 : index
    %143 = vector.load %arg14[%c0_79, %c0_80] : memref<8x32xf32, #tpu.memory_space<vmem>>, vector<8x32xf32>
    %c0_81 = arith.constant 0 : index
    %c0_82 = arith.constant 0 : index
    %144 = vector.load %arg15[%c0_81, %c0_82] : memref<8x32xf32, #tpu.memory_space<vmem>>, vector<8x32xf32>
    %145 = arith.index_cast %142 : i32 to index
    %c0_83 = arith.constant 0 : index
    %146 = vector.load %arg13[%145, %c0_83] : memref<64x128xf32, #tpu.memory_space<vmem>>, vector<8x128xf32>
    %cst_84 = arith.constant dense<0.000000e+00> : vector<8x128xf32>
    %147 = tpu.matmul %143, %14, %cst_84 {dimension_numbers = #tpu.dot_dimension_numbers<[1], [0], [0], [1], [0, 0, 1, 1], [], []>} : vector<8x32xf32>, vector<32x128xf32>, vector<8x128xf32> -> vector<8x128xf32>
    %148 = arith.addf %146, %147 : vector<8x128xf32>
    %149 = arith.negf %148 : vector<8x128xf32>
    %150 = math.exp %149 : vector<8x128xf32>
    %cst_85 = arith.constant 1.000000e+00 : f32
    %151 = vector.broadcast %cst_85 : f32 to vector<8x128xf32>
    %152 = arith.addf %151, %150 : vector<8x128xf32>
    %153 = arith.divf %151, %152 : vector<8x128xf32>
    %154 = math.tanh %148 : vector<8x128xf32>
    %155 = arith.select %4, %153, %154 : vector<8x128xi1>, vector<8x128xf32>
    %156 = vector.extract_strided_slice %155 {offsets = [0, 0], sizes = [8, 32], strides = [1, 1]} : vector<8x128xf32> to vector<8x32xf32>
    %157 = vector.extract_strided_slice %155 {offsets = [0, 32], sizes = [8, 32], strides = [1, 1]} : vector<8x128xf32> to vector<8x32xf32>
    %158 = vector.extract_strided_slice %155 {offsets = [0, 64], sizes = [8, 32], strides = [1, 1]} : vector<8x128xf32> to vector<8x32xf32>
    %159 = vector.extract_strided_slice %155 {offsets = [0, 96], sizes = [8, 32], strides = [1, 1]} : vector<8x128xf32> to vector<8x32xf32>
    %160 = arith.mulf %157, %144 : vector<8x32xf32>
    %161 = arith.mulf %156, %159 : vector<8x32xf32>
    %162 = arith.addf %160, %161 : vector<8x32xf32>
    %163 = math.tanh %162 : vector<8x32xf32>
    %164 = arith.mulf %158, %163 : vector<8x32xf32>
    %c0_86 = arith.constant 0 : index
    %c0_87 = arith.constant 0 : index
    %165 = vector.load %arg15[%c0_86, %c0_87] : memref<8x32xf32, #tpu.memory_space<vmem>>, vector<8x32xf32>
    tpu.vector_store %arg15[%c0_86, %c0_87], %162 {strides = array<i32>} : memref<8x32xf32, #tpu.memory_space<vmem>>, vector<8x32xf32>,
    %c0_88 = arith.constant 0 : index
    %c0_89 = arith.constant 0 : index
    %166 = vector.load %arg14[%c0_88, %c0_89] : memref<8x32xf32, #tpu.memory_space<vmem>>, vector<8x32xf32>
    tpu.vector_store %arg14[%c0_88, %c0_89], %164 {strides = array<i32>} : memref<8x32xf32, #tpu.memory_space<vmem>>, vector<8x32xf32>,
    %167 = arith.index_cast %142 : i32 to index
    %c0_90 = arith.constant 0 : index
    %168 = vector.load %arg12[%167, %c0_90] : memref<64x32xf32, #tpu.memory_space<vmem>>, vector<8x32xf32>
    tpu.vector_store %arg12[%167, %c0_90], %164 {strides = array<i32>} : memref<64x32xf32, #tpu.memory_space<vmem>>, vector<8x32xf32>,
    %c5_i32 = arith.constant 5 : i32
    %c1_i32_91 = arith.constant 1 : i32
    %169 = arith.muli %c5_i32, %c1_i32_91 : i32
    %c0_i32_92 = arith.constant 0 : i32
    %170 = arith.addi %c0_i32_92, %169 : i32
    %c8_i32_93 = arith.constant 8 : i32
    %171 = arith.muli %170, %c8_i32_93 : i32
    %172 = tpu.assume_multiple %171, 8 : i32
    %c0_94 = arith.constant 0 : index
    %c0_95 = arith.constant 0 : index
    %173 = vector.load %arg14[%c0_94, %c0_95] : memref<8x32xf32, #tpu.memory_space<vmem>>, vector<8x32xf32>
    %c0_96 = arith.constant 0 : index
    %c0_97 = arith.constant 0 : index
    %174 = vector.load %arg15[%c0_96, %c0_97] : memref<8x32xf32, #tpu.memory_space<vmem>>, vector<8x32xf32>
    %175 = arith.index_cast %172 : i32 to index
    %c0_98 = arith.constant 0 : index
    %176 = vector.load %arg13[%175, %c0_98] : memref<64x128xf32, #tpu.memory_space<vmem>>, vector<8x128xf32>
    %cst_99 = arith.constant dense<0.000000e+00> : vector<8x128xf32>
    %177 = tpu.matmul %173, %14, %cst_99 {dimension_numbers = #tpu.dot_dimension_numbers<[1], [0], [0], [1], [0, 0, 1, 1], [], []>} : vector<8x32xf32>, vector<32x128xf32>, vector<8x128xf32> -> vector<8x128xf32>
    %178 = arith.addf %176, %177 : vector<8x128xf32>
    %179 = arith.negf %178 : vector<8x128xf32>
    %180 = math.exp %179 : vector<8x128xf32>
    %cst_100 = arith.constant 1.000000e+00 : f32
    %181 = vector.broadcast %cst_100 : f32 to vector<8x128xf32>
    %182 = arith.addf %181, %180 : vector<8x128xf32>
    %183 = arith.divf %181, %182 : vector<8x128xf32>
    %184 = math.tanh %178 : vector<8x128xf32>
    %185 = arith.select %4, %183, %184 : vector<8x128xi1>, vector<8x128xf32>
    %186 = vector.extract_strided_slice %185 {offsets = [0, 0], sizes = [8, 32], strides = [1, 1]} : vector<8x128xf32> to vector<8x32xf32>
    %187 = vector.extract_strided_slice %185 {offsets = [0, 32], sizes = [8, 32], strides = [1, 1]} : vector<8x128xf32> to vector<8x32xf32>
    %188 = vector.extract_strided_slice %185 {offsets = [0, 64], sizes = [8, 32], strides = [1, 1]} : vector<8x128xf32> to vector<8x32xf32>
    %189 = vector.extract_strided_slice %185 {offsets = [0, 96], sizes = [8, 32], strides = [1, 1]} : vector<8x128xf32> to vector<8x32xf32>
    %190 = arith.mulf %187, %174 : vector<8x32xf32>
    %191 = arith.mulf %186, %189 : vector<8x32xf32>
    %192 = arith.addf %190, %191 : vector<8x32xf32>
    %193 = math.tanh %192 : vector<8x32xf32>
    %194 = arith.mulf %188, %193 : vector<8x32xf32>
    %c0_101 = arith.constant 0 : index
    %c0_102 = arith.constant 0 : index
    %195 = vector.load %arg15[%c0_101, %c0_102] : memref<8x32xf32, #tpu.memory_space<vmem>>, vector<8x32xf32>
    tpu.vector_store %arg15[%c0_101, %c0_102], %192 {strides = array<i32>} : memref<8x32xf32, #tpu.memory_space<vmem>>, vector<8x32xf32>,
    %c0_103 = arith.constant 0 : index
    %c0_104 = arith.constant 0 : index
    %196 = vector.load %arg14[%c0_103, %c0_104] : memref<8x32xf32, #tpu.memory_space<vmem>>, vector<8x32xf32>
    tpu.vector_store %arg14[%c0_103, %c0_104], %194 {strides = array<i32>} : memref<8x32xf32, #tpu.memory_space<vmem>>, vector<8x32xf32>,
    %197 = arith.index_cast %172 : i32 to index
    %c0_105 = arith.constant 0 : index
    %198 = vector.load %arg12[%197, %c0_105] : memref<64x32xf32, #tpu.memory_space<vmem>>, vector<8x32xf32>
    tpu.vector_store %arg12[%197, %c0_105], %194 {strides = array<i32>} : memref<64x32xf32, #tpu.memory_space<vmem>>, vector<8x32xf32>,
    %c6_i32 = arith.constant 6 : i32
    %c1_i32_106 = arith.constant 1 : i32
    %199 = arith.muli %c6_i32, %c1_i32_106 : i32
    %c0_i32_107 = arith.constant 0 : i32
    %200 = arith.addi %c0_i32_107, %199 : i32
    %c8_i32_108 = arith.constant 8 : i32
    %201 = arith.muli %200, %c8_i32_108 : i32
    %202 = tpu.assume_multiple %201, 8 : i32
    %c0_109 = arith.constant 0 : index
    %c0_110 = arith.constant 0 : index
    %203 = vector.load %arg14[%c0_109, %c0_110] : memref<8x32xf32, #tpu.memory_space<vmem>>, vector<8x32xf32>
    %c0_111 = arith.constant 0 : index
    %c0_112 = arith.constant 0 : index
    %204 = vector.load %arg15[%c0_111, %c0_112] : memref<8x32xf32, #tpu.memory_space<vmem>>, vector<8x32xf32>
    %205 = arith.index_cast %202 : i32 to index
    %c0_113 = arith.constant 0 : index
    %206 = vector.load %arg13[%205, %c0_113] : memref<64x128xf32, #tpu.memory_space<vmem>>, vector<8x128xf32>
    %cst_114 = arith.constant dense<0.000000e+00> : vector<8x128xf32>
    %207 = tpu.matmul %203, %14, %cst_114 {dimension_numbers = #tpu.dot_dimension_numbers<[1], [0], [0], [1], [0, 0, 1, 1], [], []>} : vector<8x32xf32>, vector<32x128xf32>, vector<8x128xf32> -> vector<8x128xf32>
    %208 = arith.addf %206, %207 : vector<8x128xf32>
    %209 = arith.negf %208 : vector<8x128xf32>
    %210 = math.exp %209 : vector<8x128xf32>
    %cst_115 = arith.constant 1.000000e+00 : f32
    %211 = vector.broadcast %cst_115 : f32 to vector<8x128xf32>
    %212 = arith.addf %211, %210 : vector<8x128xf32>
    %213 = arith.divf %211, %212 : vector<8x128xf32>
    %214 = math.tanh %208 : vector<8x128xf32>
    %215 = arith.select %4, %213, %214 : vector<8x128xi1>, vector<8x128xf32>
    %216 = vector.extract_strided_slice %215 {offsets = [0, 0], sizes = [8, 32], strides = [1, 1]} : vector<8x128xf32> to vector<8x32xf32>
    %217 = vector.extract_strided_slice %215 {offsets = [0, 32], sizes = [8, 32], strides = [1, 1]} : vector<8x128xf32> to vector<8x32xf32>
    %218 = vector.extract_strided_slice %215 {offsets = [0, 64], sizes = [8, 32], strides = [1, 1]} : vector<8x128xf32> to vector<8x32xf32>
    %219 = vector.extract_strided_slice %215 {offsets = [0, 96], sizes = [8, 32], strides = [1, 1]} : vector<8x128xf32> to vector<8x32xf32>
    %220 = arith.mulf %217, %204 : vector<8x32xf32>
    %221 = arith.mulf %216, %219 : vector<8x32xf32>
    %222 = arith.addf %220, %221 : vector<8x32xf32>
    %223 = math.tanh %222 : vector<8x32xf32>
    %224 = arith.mulf %218, %223 : vector<8x32xf32>
    %c0_116 = arith.constant 0 : index
    %c0_117 = arith.constant 0 : index
    %225 = vector.load %arg15[%c0_116, %c0_117] : memref<8x32xf32, #tpu.memory_space<vmem>>, vector<8x32xf32>
    tpu.vector_store %arg15[%c0_116, %c0_117], %222 {strides = array<i32>} : memref<8x32xf32, #tpu.memory_space<vmem>>, vector<8x32xf32>,
    %c0_118 = arith.constant 0 : index
    %c0_119 = arith.constant 0 : index
    %226 = vector.load %arg14[%c0_118, %c0_119] : memref<8x32xf32, #tpu.memory_space<vmem>>, vector<8x32xf32>
    tpu.vector_store %arg14[%c0_118, %c0_119], %224 {strides = array<i32>} : memref<8x32xf32, #tpu.memory_space<vmem>>, vector<8x32xf32>,
    %227 = arith.index_cast %202 : i32 to index
    %c0_120 = arith.constant 0 : index
    %228 = vector.load %arg12[%227, %c0_120] : memref<64x32xf32, #tpu.memory_space<vmem>>, vector<8x32xf32>
    tpu.vector_store %arg12[%227, %c0_120], %224 {strides = array<i32>} : memref<64x32xf32, #tpu.memory_space<vmem>>, vector<8x32xf32>,
    %c7_i32 = arith.constant 7 : i32
    %c1_i32_121 = arith.constant 1 : i32
    %229 = arith.muli %c7_i32, %c1_i32_121 : i32
    %c0_i32_122 = arith.constant 0 : i32
    %230 = arith.addi %c0_i32_122, %229 : i32
    %c8_i32_123 = arith.constant 8 : i32
    %231 = arith.muli %230, %c8_i32_123 : i32
    %232 = tpu.assume_multiple %231, 8 : i32
    %c0_124 = arith.constant 0 : index
    %c0_125 = arith.constant 0 : index
    %233 = vector.load %arg14[%c0_124, %c0_125] : memref<8x32xf32, #tpu.memory_space<vmem>>, vector<8x32xf32>
    %c0_126 = arith.constant 0 : index
    %c0_127 = arith.constant 0 : index
    %234 = vector.load %arg15[%c0_126, %c0_127] : memref<8x32xf32, #tpu.memory_space<vmem>>, vector<8x32xf32>
    %235 = arith.index_cast %232 : i32 to index
    %c0_128 = arith.constant 0 : index
    %236 = vector.load %arg13[%235, %c0_128] : memref<64x128xf32, #tpu.memory_space<vmem>>, vector<8x128xf32>
    %cst_129 = arith.constant dense<0.000000e+00> : vector<8x128xf32>
    %237 = tpu.matmul %233, %14, %cst_129 {dimension_numbers = #tpu.dot_dimension_numbers<[1], [0], [0], [1], [0, 0, 1, 1], [], []>} : vector<8x32xf32>, vector<32x128xf32>, vector<8x128xf32> -> vector<8x128xf32>
    %238 = arith.addf %236, %237 : vector<8x128xf32>
    %239 = arith.negf %238 : vector<8x128xf32>
    %240 = math.exp %239 : vector<8x128xf32>
    %cst_130 = arith.constant 1.000000e+00 : f32
    %241 = vector.broadcast %cst_130 : f32 to vector<8x128xf32>
    %242 = arith.addf %241, %240 : vector<8x128xf32>
    %243 = arith.divf %241, %242 : vector<8x128xf32>
    %244 = math.tanh %238 : vector<8x128xf32>
    %245 = arith.select %4, %243, %244 : vector<8x128xi1>, vector<8x128xf32>
    %246 = vector.extract_strided_slice %245 {offsets = [0, 0], sizes = [8, 32], strides = [1, 1]} : vector<8x128xf32> to vector<8x32xf32>
    %247 = vector.extract_strided_slice %245 {offsets = [0, 32], sizes = [8, 32], strides = [1, 1]} : vector<8x128xf32> to vector<8x32xf32>
    %248 = vector.extract_strided_slice %245 {offsets = [0, 64], sizes = [8, 32], strides = [1, 1]} : vector<8x128xf32> to vector<8x32xf32>
    %249 = vector.extract_strided_slice %245 {offsets = [0, 96], sizes = [8, 32], strides = [1, 1]} : vector<8x128xf32> to vector<8x32xf32>
    %250 = arith.mulf %247, %234 : vector<8x32xf32>
    %251 = arith.mulf %246, %249 : vector<8x32xf32>
    %252 = arith.addf %250, %251 : vector<8x32xf32>
    %253 = math.tanh %252 : vector<8x32xf32>
    %254 = arith.mulf %248, %253 : vector<8x32xf32>
    %c0_131 = arith.constant 0 : index
    %c0_132 = arith.constant 0 : index
    %255 = vector.load %arg15[%c0_131, %c0_132] : memref<8x32xf32, #tpu.memory_space<vmem>>, vector<8x32xf32>
    tpu.vector_store %arg15[%c0_131, %c0_132], %252 {strides = array<i32>} : memref<8x32xf32, #tpu.memory_space<vmem>>, vector<8x32xf32>,
    %c0_133 = arith.constant 0 : index
    %c0_134 = arith.constant 0 : index
    %256 = vector.load %arg14[%c0_133, %c0_134] : memref<8x32xf32, #tpu.memory_space<vmem>>, vector<8x32xf32>
    tpu.vector_store %arg14[%c0_133, %c0_134], %254 {strides = array<i32>} : memref<8x32xf32, #tpu.memory_space<vmem>>, vector<8x32xf32>,
    %257 = arith.index_cast %232 : i32 to index
    %c0_135 = arith.constant 0 : index
    %258 = vector.load %arg12[%257, %c0_135] : memref<64x32xf32, #tpu.memory_space<vmem>>, vector<8x32xf32>
    tpu.vector_store %arg12[%257, %c0_135], %254 {strides = array<i32>} : memref<64x32xf32, #tpu.memory_space<vmem>>, vector<8x32xf32>,
    %c8_i32_136 = arith.constant 8 : i32
    %c0_137 = arith.constant 0 : index
    %c0_138 = arith.constant 0 : index
    %259 = vector.load %arg12[%c0_137, %c0_138] : memref<64x32xf32, #tpu.memory_space<vmem>>, vector<64x32xf32>
    %c0_139 = arith.constant 0 : index
    %c0_140 = arith.constant 0 : index
    %c0_141 = arith.constant 0 : index
    %260 = vector.load %arg4[%c0_139, %c0_140, %c0_141] : memref<1x32x128xf32, #tpu.memory_space<vmem>>, vector<1x32x128xf32>
    %261 = vector.shape_cast %260 : vector<1x32x128xf32> to vector<32x128xf32>
    %cst_142 = arith.constant dense<0.000000e+00> : vector<64x128xf32>
    %262 = tpu.matmul %259, %261, %cst_142 {dimension_numbers = #tpu.dot_dimension_numbers<[1], [0], [0], [1], [0, 0, 1, 1], [], []>} : vector<64x32xf32>, vector<32x128xf32>, vector<64x128xf32> -> vector<64x128xf32>
    %c0_143 = arith.constant 0 : index
    %c0_144 = arith.constant 0 : index
    %c0_145 = arith.constant 0 : index
    %263 = vector.load %arg5[%c0_143, %c0_144, %c0_145] : memref<1x1x128xf32, #tpu.memory_space<vmem>>, vector<1x1x128xf32>
    %264 = vector.shape_cast %263 : vector<1x1x128xf32> to vector<1x128xf32>
    %265 = vector.broadcast %264 : vector<1x128xf32> to vector<64x128xf32>
    %266 = arith.addf %262, %265 : vector<64x128xf32>
    %c0_146 = arith.constant 0 : index
    %c0_147 = arith.constant 0 : index
    %267 = vector.load %arg13[%c0_146, %c0_147] : memref<64x128xf32, #tpu.memory_space<vmem>>, vector<64x128xf32>
    tpu.vector_store %arg13[%c0_146, %c0_147], %266 {strides = array<i32>} : memref<64x128xf32, #tpu.memory_space<vmem>>, vector<64x128xf32>,
    %c1 = arith.constant 1 : index
    %c0_148 = arith.constant 0 : index
    %c0_149 = arith.constant 0 : index
    %268 = vector.load %arg6[%c1, %c0_148, %c0_149] : memref<2x32x128xf32, #tpu.memory_space<vmem>>, vector<1x32x128xf32>
    %269 = vector.shape_cast %268 : vector<1x32x128xf32> to vector<32x128xf32>
    %cst_150 = arith.constant 0.000000e+00 : f32
    %270 = vector.broadcast %cst_150 : f32 to vector<8x32xf32>
    %c0_151 = arith.constant 0 : index
    %c0_152 = arith.constant 0 : index
    %271 = vector.load %arg14[%c0_151, %c0_152] : memref<8x32xf32, #tpu.memory_space<vmem>>, vector<8x32xf32>
    tpu.vector_store %arg14[%c0_151, %c0_152], %270 {strides = array<i32>} : memref<8x32xf32, #tpu.memory_space<vmem>>, vector<8x32xf32>,
    %cst_153 = arith.constant 0.000000e+00 : f32
    %272 = vector.broadcast %cst_153 : f32 to vector<8x32xf32>
    %c0_154 = arith.constant 0 : index
    %c0_155 = arith.constant 0 : index
    %273 = vector.load %arg15[%c0_154, %c0_155] : memref<8x32xf32, #tpu.memory_space<vmem>>, vector<8x32xf32>
    tpu.vector_store %arg15[%c0_154, %c0_155], %272 {strides = array<i32>} : memref<8x32xf32, #tpu.memory_space<vmem>>, vector<8x32xf32>,
    %c0_i32_156 = arith.constant 0 : i32
    %c1_i32_157 = arith.constant 1 : i32
    %274 = arith.muli %c0_i32_156, %c1_i32_157 : i32
    %c0_i32_158 = arith.constant 0 : i32
    %275 = arith.addi %c0_i32_158, %274 : i32
    %c8_i32_159 = arith.constant 8 : i32
    %276 = arith.muli %275, %c8_i32_159 : i32
    %277 = tpu.assume_multiple %276, 8 : i32
    %c0_160 = arith.constant 0 : index
    %c0_161 = arith.constant 0 : index
    %278 = vector.load %arg14[%c0_160, %c0_161] : memref<8x32xf32, #tpu.memory_space<vmem>>, vector<8x32xf32>
    %c0_162 = arith.constant 0 : index
    %c0_163 = arith.constant 0 : index
    %279 = vector.load %arg15[%c0_162, %c0_163] : memref<8x32xf32, #tpu.memory_space<vmem>>, vector<8x32xf32>
    %280 = arith.index_cast %277 : i32 to index
    %c0_164 = arith.constant 0 : index
    %281 = vector.load %arg13[%280, %c0_164] : memref<64x128xf32, #tpu.memory_space<vmem>>, vector<8x128xf32>
    %cst_165 = arith.constant dense<0.000000e+00> : vector<8x128xf32>
    %282 = tpu.matmul %278, %269, %cst_165 {dimension_numbers = #tpu.dot_dimension_numbers<[1], [0], [0], [1], [0, 0, 1, 1], [], []>} : vector<8x32xf32>, vector<32x128xf32>, vector<8x128xf32> -> vector<8x128xf32>
    %283 = arith.addf %281, %282 : vector<8x128xf32>
    %284 = arith.negf %283 : vector<8x128xf32>
    %285 = math.exp %284 : vector<8x128xf32>
    %cst_166 = arith.constant 1.000000e+00 : f32
    %286 = vector.broadcast %cst_166 : f32 to vector<8x128xf32>
    %287 = arith.addf %286, %285 : vector<8x128xf32>
    %288 = arith.divf %286, %287 : vector<8x128xf32>
    %289 = math.tanh %283 : vector<8x128xf32>
    %290 = arith.select %4, %288, %289 : vector<8x128xi1>, vector<8x128xf32>
    %291 = vector.extract_strided_slice %290 {offsets = [0, 0], sizes = [8, 32], strides = [1, 1]} : vector<8x128xf32> to vector<8x32xf32>
    %292 = vector.extract_strided_slice %290 {offsets = [0, 32], sizes = [8, 32], strides = [1, 1]} : vector<8x128xf32> to vector<8x32xf32>
    %293 = vector.extract_strided_slice %290 {offsets = [0, 64], sizes = [8, 32], strides = [1, 1]} : vector<8x128xf32> to vector<8x32xf32>
    %294 = vector.extract_strided_slice %290 {offsets = [0, 96], sizes = [8, 32], strides = [1, 1]} : vector<8x128xf32> to vector<8x32xf32>
    %295 = arith.mulf %292, %279 : vector<8x32xf32>
    %296 = arith.mulf %291, %294 : vector<8x32xf32>
    %297 = arith.addf %295, %296 : vector<8x32xf32>
    %298 = math.tanh %297 : vector<8x32xf32>
    %299 = arith.mulf %293, %298 : vector<8x32xf32>
    %c0_167 = arith.constant 0 : index
    %c0_168 = arith.constant 0 : index
    %300 = vector.load %arg15[%c0_167, %c0_168] : memref<8x32xf32, #tpu.memory_space<vmem>>, vector<8x32xf32>
    tpu.vector_store %arg15[%c0_167, %c0_168], %297 {strides = array<i32>} : memref<8x32xf32, #tpu.memory_space<vmem>>, vector<8x32xf32>,
    %c0_169 = arith.constant 0 : index
    %c0_170 = arith.constant 0 : index
    %301 = vector.load %arg14[%c0_169, %c0_170] : memref<8x32xf32, #tpu.memory_space<vmem>>, vector<8x32xf32>
    tpu.vector_store %arg14[%c0_169, %c0_170], %299 {strides = array<i32>} : memref<8x32xf32, #tpu.memory_space<vmem>>, vector<8x32xf32>,
    %302 = arith.index_cast %277 : i32 to index
    %c0_171 = arith.constant 0 : index
    %303 = vector.load %arg12[%302, %c0_171] : memref<64x32xf32, #tpu.memory_space<vmem>>, vector<8x32xf32>
    tpu.vector_store %arg12[%302, %c0_171], %299 {strides = array<i32>} : memref<64x32xf32, #tpu.memory_space<vmem>>, vector<8x32xf32>,
    %c1_i32_172 = arith.constant 1 : i32
    %c1_i32_173 = arith.constant 1 : i32
    %304 = arith.muli %c1_i32_172, %c1_i32_173 : i32
    %c0_i32_174 = arith.constant 0 : i32
    %305 = arith.addi %c0_i32_174, %304 : i32
    %c8_i32_175 = arith.constant 8 : i32
    %306 = arith.muli %305, %c8_i32_175 : i32
    %307 = tpu.assume_multiple %306, 8 : i32
    %c0_176 = arith.constant 0 : index
    %c0_177 = arith.constant 0 : index
    %308 = vector.load %arg14[%c0_176, %c0_177] : memref<8x32xf32, #tpu.memory_space<vmem>>, vector<8x32xf32>
    %c0_178 = arith.constant 0 : index
    %c0_179 = arith.constant 0 : index
    %309 = vector.load %arg15[%c0_178, %c0_179] : memref<8x32xf32, #tpu.memory_space<vmem>>, vector<8x32xf32>
    %310 = arith.index_cast %307 : i32 to index
    %c0_180 = arith.constant 0 : index
    %311 = vector.load %arg13[%310, %c0_180] : memref<64x128xf32, #tpu.memory_space<vmem>>, vector<8x128xf32>
    %cst_181 = arith.constant dense<0.000000e+00> : vector<8x128xf32>
    %312 = tpu.matmul %308, %269, %cst_181 {dimension_numbers = #tpu.dot_dimension_numbers<[1], [0], [0], [1], [0, 0, 1, 1], [], []>} : vector<8x32xf32>, vector<32x128xf32>, vector<8x128xf32> -> vector<8x128xf32>
    %313 = arith.addf %311, %312 : vector<8x128xf32>
    %314 = arith.negf %313 : vector<8x128xf32>
    %315 = math.exp %314 : vector<8x128xf32>
    %cst_182 = arith.constant 1.000000e+00 : f32
    %316 = vector.broadcast %cst_182 : f32 to vector<8x128xf32>
    %317 = arith.addf %316, %315 : vector<8x128xf32>
    %318 = arith.divf %316, %317 : vector<8x128xf32>
    %319 = math.tanh %313 : vector<8x128xf32>
    %320 = arith.select %4, %318, %319 : vector<8x128xi1>, vector<8x128xf32>
    %321 = vector.extract_strided_slice %320 {offsets = [0, 0], sizes = [8, 32], strides = [1, 1]} : vector<8x128xf32> to vector<8x32xf32>
    %322 = vector.extract_strided_slice %320 {offsets = [0, 32], sizes = [8, 32], strides = [1, 1]} : vector<8x128xf32> to vector<8x32xf32>
    %323 = vector.extract_strided_slice %320 {offsets = [0, 64], sizes = [8, 32], strides = [1, 1]} : vector<8x128xf32> to vector<8x32xf32>
    %324 = vector.extract_strided_slice %320 {offsets = [0, 96], sizes = [8, 32], strides = [1, 1]} : vector<8x128xf32> to vector<8x32xf32>
    %325 = arith.mulf %322, %309 : vector<8x32xf32>
    %326 = arith.mulf %321, %324 : vector<8x32xf32>
    %327 = arith.addf %325, %326 : vector<8x32xf32>
    %328 = math.tanh %327 : vector<8x32xf32>
    %329 = arith.mulf %323, %328 : vector<8x32xf32>
    %c0_183 = arith.constant 0 : index
    %c0_184 = arith.constant 0 : index
    %330 = vector.load %arg15[%c0_183, %c0_184] : memref<8x32xf32, #tpu.memory_space<vmem>>, vector<8x32xf32>
    tpu.vector_store %arg15[%c0_183, %c0_184], %327 {strides = array<i32>} : memref<8x32xf32, #tpu.memory_space<vmem>>, vector<8x32xf32>,
    %c0_185 = arith.constant 0 : index
    %c0_186 = arith.constant 0 : index
    %331 = vector.load %arg14[%c0_185, %c0_186] : memref<8x32xf32, #tpu.memory_space<vmem>>, vector<8x32xf32>
    tpu.vector_store %arg14[%c0_185, %c0_186], %329 {strides = array<i32>} : memref<8x32xf32, #tpu.memory_space<vmem>>, vector<8x32xf32>,
    %332 = arith.index_cast %307 : i32 to index
    %c0_187 = arith.constant 0 : index
    %333 = vector.load %arg12[%332, %c0_187] : memref<64x32xf32, #tpu.memory_space<vmem>>, vector<8x32xf32>
    tpu.vector_store %arg12[%332, %c0_187], %329 {strides = array<i32>} : memref<64x32xf32, #tpu.memory_space<vmem>>, vector<8x32xf32>,
    %c2_i32_188 = arith.constant 2 : i32
    %c1_i32_189 = arith.constant 1 : i32
    %334 = arith.muli %c2_i32_188, %c1_i32_189 : i32
    %c0_i32_190 = arith.constant 0 : i32
    %335 = arith.addi %c0_i32_190, %334 : i32
    %c8_i32_191 = arith.constant 8 : i32
    %336 = arith.muli %335, %c8_i32_191 : i32
    %337 = tpu.assume_multiple %336, 8 : i32
    %c0_192 = arith.constant 0 : index
    %c0_193 = arith.constant 0 : index
    %338 = vector.load %arg14[%c0_192, %c0_193] : memref<8x32xf32, #tpu.memory_space<vmem>>, vector<8x32xf32>
    %c0_194 = arith.constant 0 : index
    %c0_195 = arith.constant 0 : index
    %339 = vector.load %arg15[%c0_194, %c0_195] : memref<8x32xf32, #tpu.memory_space<vmem>>, vector<8x32xf32>
    %340 = arith.index_cast %337 : i32 to index
    %c0_196 = arith.constant 0 : index
    %341 = vector.load %arg13[%340, %c0_196] : memref<64x128xf32, #tpu.memory_space<vmem>>, vector<8x128xf32>
    %cst_197 = arith.constant dense<0.000000e+00> : vector<8x128xf32>
    %342 = tpu.matmul %338, %269, %cst_197 {dimension_numbers = #tpu.dot_dimension_numbers<[1], [0], [0], [1], [0, 0, 1, 1], [], []>} : vector<8x32xf32>, vector<32x128xf32>, vector<8x128xf32> -> vector<8x128xf32>
    %343 = arith.addf %341, %342 : vector<8x128xf32>
    %344 = arith.negf %343 : vector<8x128xf32>
    %345 = math.exp %344 : vector<8x128xf32>
    %cst_198 = arith.constant 1.000000e+00 : f32
    %346 = vector.broadcast %cst_198 : f32 to vector<8x128xf32>
    %347 = arith.addf %346, %345 : vector<8x128xf32>
    %348 = arith.divf %346, %347 : vector<8x128xf32>
    %349 = math.tanh %343 : vector<8x128xf32>
    %350 = arith.select %4, %348, %349 : vector<8x128xi1>, vector<8x128xf32>
    %351 = vector.extract_strided_slice %350 {offsets = [0, 0], sizes = [8, 32], strides = [1, 1]} : vector<8x128xf32> to vector<8x32xf32>
    %352 = vector.extract_strided_slice %350 {offsets = [0, 32], sizes = [8, 32], strides = [1, 1]} : vector<8x128xf32> to vector<8x32xf32>
    %353 = vector.extract_strided_slice %350 {offsets = [0, 64], sizes = [8, 32], strides = [1, 1]} : vector<8x128xf32> to vector<8x32xf32>
    %354 = vector.extract_strided_slice %350 {offsets = [0, 96], sizes = [8, 32], strides = [1, 1]} : vector<8x128xf32> to vector<8x32xf32>
    %355 = arith.mulf %352, %339 : vector<8x32xf32>
    %356 = arith.mulf %351, %354 : vector<8x32xf32>
    %357 = arith.addf %355, %356 : vector<8x32xf32>
    %358 = math.tanh %357 : vector<8x32xf32>
    %359 = arith.mulf %353, %358 : vector<8x32xf32>
    %c0_199 = arith.constant 0 : index
    %c0_200 = arith.constant 0 : index
    %360 = vector.load %arg15[%c0_199, %c0_200] : memref<8x32xf32, #tpu.memory_space<vmem>>, vector<8x32xf32>
    tpu.vector_store %arg15[%c0_199, %c0_200], %357 {strides = array<i32>} : memref<8x32xf32, #tpu.memory_space<vmem>>, vector<8x32xf32>,
    %c0_201 = arith.constant 0 : index
    %c0_202 = arith.constant 0 : index
    %361 = vector.load %arg14[%c0_201, %c0_202] : memref<8x32xf32, #tpu.memory_space<vmem>>, vector<8x32xf32>
    tpu.vector_store %arg14[%c0_201, %c0_202], %359 {strides = array<i32>} : memref<8x32xf32, #tpu.memory_space<vmem>>, vector<8x32xf32>,
    %362 = arith.index_cast %337 : i32 to index
    %c0_203 = arith.constant 0 : index
    %363 = vector.load %arg12[%362, %c0_203] : memref<64x32xf32, #tpu.memory_space<vmem>>, vector<8x32xf32>
    tpu.vector_store %arg12[%362, %c0_203], %359 {strides = array<i32>} : memref<64x32xf32, #tpu.memory_space<vmem>>, vector<8x32xf32>,
    %c3_i32_204 = arith.constant 3 : i32
    %c1_i32_205 = arith.constant 1 : i32
    %364 = arith.muli %c3_i32_204, %c1_i32_205 : i32
    %c0_i32_206 = arith.constant 0 : i32
    %365 = arith.addi %c0_i32_206, %364 : i32
    %c8_i32_207 = arith.constant 8 : i32
    %366 = arith.muli %365, %c8_i32_207 : i32
    %367 = tpu.assume_multiple %366, 8 : i32
    %c0_208 = arith.constant 0 : index
    %c0_209 = arith.constant 0 : index
    %368 = vector.load %arg14[%c0_208, %c0_209] : memref<8x32xf32, #tpu.memory_space<vmem>>, vector<8x32xf32>
    %c0_210 = arith.constant 0 : index
    %c0_211 = arith.constant 0 : index
    %369 = vector.load %arg15[%c0_210, %c0_211] : memref<8x32xf32, #tpu.memory_space<vmem>>, vector<8x32xf32>
    %370 = arith.index_cast %367 : i32 to index
    %c0_212 = arith.constant 0 : index
    %371 = vector.load %arg13[%370, %c0_212] : memref<64x128xf32, #tpu.memory_space<vmem>>, vector<8x128xf32>
    %cst_213 = arith.constant dense<0.000000e+00> : vector<8x128xf32>
    %372 = tpu.matmul %368, %269, %cst_213 {dimension_numbers = #tpu.dot_dimension_numbers<[1], [0], [0], [1], [0, 0, 1, 1], [], []>} : vector<8x32xf32>, vector<32x128xf32>, vector<8x128xf32> -> vector<8x128xf32>
    %373 = arith.addf %371, %372 : vector<8x128xf32>
    %374 = arith.negf %373 : vector<8x128xf32>
    %375 = math.exp %374 : vector<8x128xf32>
    %cst_214 = arith.constant 1.000000e+00 : f32
    %376 = vector.broadcast %cst_214 : f32 to vector<8x128xf32>
    %377 = arith.addf %376, %375 : vector<8x128xf32>
    %378 = arith.divf %376, %377 : vector<8x128xf32>
    %379 = math.tanh %373 : vector<8x128xf32>
    %380 = arith.select %4, %378, %379 : vector<8x128xi1>, vector<8x128xf32>
    %381 = vector.extract_strided_slice %380 {offsets = [0, 0], sizes = [8, 32], strides = [1, 1]} : vector<8x128xf32> to vector<8x32xf32>
    %382 = vector.extract_strided_slice %380 {offsets = [0, 32], sizes = [8, 32], strides = [1, 1]} : vector<8x128xf32> to vector<8x32xf32>
    %383 = vector.extract_strided_slice %380 {offsets = [0, 64], sizes = [8, 32], strides = [1, 1]} : vector<8x128xf32> to vector<8x32xf32>
    %384 = vector.extract_strided_slice %380 {offsets = [0, 96], sizes = [8, 32], strides = [1, 1]} : vector<8x128xf32> to vector<8x32xf32>
    %385 = arith.mulf %382, %369 : vector<8x32xf32>
    %386 = arith.mulf %381, %384 : vector<8x32xf32>
    %387 = arith.addf %385, %386 : vector<8x32xf32>
    %388 = math.tanh %387 : vector<8x32xf32>
    %389 = arith.mulf %383, %388 : vector<8x32xf32>
    %c0_215 = arith.constant 0 : index
    %c0_216 = arith.constant 0 : index
    %390 = vector.load %arg15[%c0_215, %c0_216] : memref<8x32xf32, #tpu.memory_space<vmem>>, vector<8x32xf32>
    tpu.vector_store %arg15[%c0_215, %c0_216], %387 {strides = array<i32>} : memref<8x32xf32, #tpu.memory_space<vmem>>, vector<8x32xf32>,
    %c0_217 = arith.constant 0 : index
    %c0_218 = arith.constant 0 : index
    %391 = vector.load %arg14[%c0_217, %c0_218] : memref<8x32xf32, #tpu.memory_space<vmem>>, vector<8x32xf32>
    tpu.vector_store %arg14[%c0_217, %c0_218], %389 {strides = array<i32>} : memref<8x32xf32, #tpu.memory_space<vmem>>, vector<8x32xf32>,
    %392 = arith.index_cast %367 : i32 to index
    %c0_219 = arith.constant 0 : index
    %393 = vector.load %arg12[%392, %c0_219] : memref<64x32xf32, #tpu.memory_space<vmem>>, vector<8x32xf32>
    tpu.vector_store %arg12[%392, %c0_219], %389 {strides = array<i32>} : memref<64x32xf32, #tpu.memory_space<vmem>>, vector<8x32xf32>,
    %c4_i32_220 = arith.constant 4 : i32
    %c1_i32_221 = arith.constant 1 : i32
    %394 = arith.muli %c4_i32_220, %c1_i32_221 : i32
    %c0_i32_222 = arith.constant 0 : i32
    %395 = arith.addi %c0_i32_222, %394 : i32
    %c8_i32_223 = arith.constant 8 : i32
    %396 = arith.muli %395, %c8_i32_223 : i32
    %397 = tpu.assume_multiple %396, 8 : i32
    %c0_224 = arith.constant 0 : index
    %c0_225 = arith.constant 0 : index
    %398 = vector.load %arg14[%c0_224, %c0_225] : memref<8x32xf32, #tpu.memory_space<vmem>>, vector<8x32xf32>
    %c0_226 = arith.constant 0 : index
    %c0_227 = arith.constant 0 : index
    %399 = vector.load %arg15[%c0_226, %c0_227] : memref<8x32xf32, #tpu.memory_space<vmem>>, vector<8x32xf32>
    %400 = arith.index_cast %397 : i32 to index
    %c0_228 = arith.constant 0 : index
    %401 = vector.load %arg13[%400, %c0_228] : memref<64x128xf32, #tpu.memory_space<vmem>>, vector<8x128xf32>
    %cst_229 = arith.constant dense<0.000000e+00> : vector<8x128xf32>
    %402 = tpu.matmul %398, %269, %cst_229 {dimension_numbers = #tpu.dot_dimension_numbers<[1], [0], [0], [1], [0, 0, 1, 1], [], []>} : vector<8x32xf32>, vector<32x128xf32>, vector<8x128xf32> -> vector<8x128xf32>
    %403 = arith.addf %401, %402 : vector<8x128xf32>
    %404 = arith.negf %403 : vector<8x128xf32>
    %405 = math.exp %404 : vector<8x128xf32>
    %cst_230 = arith.constant 1.000000e+00 : f32
    %406 = vector.broadcast %cst_230 : f32 to vector<8x128xf32>
    %407 = arith.addf %406, %405 : vector<8x128xf32>
    %408 = arith.divf %406, %407 : vector<8x128xf32>
    %409 = math.tanh %403 : vector<8x128xf32>
    %410 = arith.select %4, %408, %409 : vector<8x128xi1>, vector<8x128xf32>
    %411 = vector.extract_strided_slice %410 {offsets = [0, 0], sizes = [8, 32], strides = [1, 1]} : vector<8x128xf32> to vector<8x32xf32>
    %412 = vector.extract_strided_slice %410 {offsets = [0, 32], sizes = [8, 32], strides = [1, 1]} : vector<8x128xf32> to vector<8x32xf32>
    %413 = vector.extract_strided_slice %410 {offsets = [0, 64], sizes = [8, 32], strides = [1, 1]} : vector<8x128xf32> to vector<8x32xf32>
    %414 = vector.extract_strided_slice %410 {offsets = [0, 96], sizes = [8, 32], strides = [1, 1]} : vector<8x128xf32> to vector<8x32xf32>
    %415 = arith.mulf %412, %399 : vector<8x32xf32>
    %416 = arith.mulf %411, %414 : vector<8x32xf32>
    %417 = arith.addf %415, %416 : vector<8x32xf32>
    %418 = math.tanh %417 : vector<8x32xf32>
    %419 = arith.mulf %413, %418 : vector<8x32xf32>
    %c0_231 = arith.constant 0 : index
    %c0_232 = arith.constant 0 : index
    %420 = vector.load %arg15[%c0_231, %c0_232] : memref<8x32xf32, #tpu.memory_space<vmem>>, vector<8x32xf32>
    tpu.vector_store %arg15[%c0_231, %c0_232], %417 {strides = array<i32>} : memref<8x32xf32, #tpu.memory_space<vmem>>, vector<8x32xf32>,
    %c0_233 = arith.constant 0 : index
    %c0_234 = arith.constant 0 : index
    %421 = vector.load %arg14[%c0_233, %c0_234] : memref<8x32xf32, #tpu.memory_space<vmem>>, vector<8x32xf32>
    tpu.vector_store %arg14[%c0_233, %c0_234], %419 {strides = array<i32>} : memref<8x32xf32, #tpu.memory_space<vmem>>, vector<8x32xf32>,
    %422 = arith.index_cast %397 : i32 to index
    %c0_235 = arith.constant 0 : index
    %423 = vector.load %arg12[%422, %c0_235] : memref<64x32xf32, #tpu.memory_space<vmem>>, vector<8x32xf32>
    tpu.vector_store %arg12[%422, %c0_235], %419 {strides = array<i32>} : memref<64x32xf32, #tpu.memory_space<vmem>>, vector<8x32xf32>,
    %c5_i32_236 = arith.constant 5 : i32
    %c1_i32_237 = arith.constant 1 : i32
    %424 = arith.muli %c5_i32_236, %c1_i32_237 : i32
    %c0_i32_238 = arith.constant 0 : i32
    %425 = arith.addi %c0_i32_238, %424 : i32
    %c8_i32_239 = arith.constant 8 : i32
    %426 = arith.muli %425, %c8_i32_239 : i32
    %427 = tpu.assume_multiple %426, 8 : i32
    %c0_240 = arith.constant 0 : index
    %c0_241 = arith.constant 0 : index
    %428 = vector.load %arg14[%c0_240, %c0_241] : memref<8x32xf32, #tpu.memory_space<vmem>>, vector<8x32xf32>
    %c0_242 = arith.constant 0 : index
    %c0_243 = arith.constant 0 : index
    %429 = vector.load %arg15[%c0_242, %c0_243] : memref<8x32xf32, #tpu.memory_space<vmem>>, vector<8x32xf32>
    %430 = arith.index_cast %427 : i32 to index
    %c0_244 = arith.constant 0 : index
    %431 = vector.load %arg13[%430, %c0_244] : memref<64x128xf32, #tpu.memory_space<vmem>>, vector<8x128xf32>
    %cst_245 = arith.constant dense<0.000000e+00> : vector<8x128xf32>
    %432 = tpu.matmul %428, %269, %cst_245 {dimension_numbers = #tpu.dot_dimension_numbers<[1], [0], [0], [1], [0, 0, 1, 1], [], []>} : vector<8x32xf32>, vector<32x128xf32>, vector<8x128xf32> -> vector<8x128xf32>
    %433 = arith.addf %431, %432 : vector<8x128xf32>
    %434 = arith.negf %433 : vector<8x128xf32>
    %435 = math.exp %434 : vector<8x128xf32>
    %cst_246 = arith.constant 1.000000e+00 : f32
    %436 = vector.broadcast %cst_246 : f32 to vector<8x128xf32>
    %437 = arith.addf %436, %435 : vector<8x128xf32>
    %438 = arith.divf %436, %437 : vector<8x128xf32>
    %439 = math.tanh %433 : vector<8x128xf32>
    %440 = arith.select %4, %438, %439 : vector<8x128xi1>, vector<8x128xf32>
    %441 = vector.extract_strided_slice %440 {offsets = [0, 0], sizes = [8, 32], strides = [1, 1]} : vector<8x128xf32> to vector<8x32xf32>
    %442 = vector.extract_strided_slice %440 {offsets = [0, 32], sizes = [8, 32], strides = [1, 1]} : vector<8x128xf32> to vector<8x32xf32>
    %443 = vector.extract_strided_slice %440 {offsets = [0, 64], sizes = [8, 32], strides = [1, 1]} : vector<8x128xf32> to vector<8x32xf32>
    %444 = vector.extract_strided_slice %440 {offsets = [0, 96], sizes = [8, 32], strides = [1, 1]} : vector<8x128xf32> to vector<8x32xf32>
    %445 = arith.mulf %442, %429 : vector<8x32xf32>
    %446 = arith.mulf %441, %444 : vector<8x32xf32>
    %447 = arith.addf %445, %446 : vector<8x32xf32>
    %448 = math.tanh %447 : vector<8x32xf32>
    %449 = arith.mulf %443, %448 : vector<8x32xf32>
    %c0_247 = arith.constant 0 : index
    %c0_248 = arith.constant 0 : index
    %450 = vector.load %arg15[%c0_247, %c0_248] : memref<8x32xf32, #tpu.memory_space<vmem>>, vector<8x32xf32>
    tpu.vector_store %arg15[%c0_247, %c0_248], %447 {strides = array<i32>} : memref<8x32xf32, #tpu.memory_space<vmem>>, vector<8x32xf32>,
    %c0_249 = arith.constant 0 : index
    %c0_250 = arith.constant 0 : index
    %451 = vector.load %arg14[%c0_249, %c0_250] : memref<8x32xf32, #tpu.memory_space<vmem>>, vector<8x32xf32>
    tpu.vector_store %arg14[%c0_249, %c0_250], %449 {strides = array<i32>} : memref<8x32xf32, #tpu.memory_space<vmem>>, vector<8x32xf32>,
    %452 = arith.index_cast %427 : i32 to index
    %c0_251 = arith.constant 0 : index
    %453 = vector.load %arg12[%452, %c0_251] : memref<64x32xf32, #tpu.memory_space<vmem>>, vector<8x32xf32>
    tpu.vector_store %arg12[%452, %c0_251], %449 {strides = array<i32>} : memref<64x32xf32, #tpu.memory_space<vmem>>, vector<8x32xf32>,
    %c6_i32_252 = arith.constant 6 : i32
    %c1_i32_253 = arith.constant 1 : i32
    %454 = arith.muli %c6_i32_252, %c1_i32_253 : i32
    %c0_i32_254 = arith.constant 0 : i32
    %455 = arith.addi %c0_i32_254, %454 : i32
    %c8_i32_255 = arith.constant 8 : i32
    %456 = arith.muli %455, %c8_i32_255 : i32
    %457 = tpu.assume_multiple %456, 8 : i32
    %c0_256 = arith.constant 0 : index
    %c0_257 = arith.constant 0 : index
    %458 = vector.load %arg14[%c0_256, %c0_257] : memref<8x32xf32, #tpu.memory_space<vmem>>, vector<8x32xf32>
    %c0_258 = arith.constant 0 : index
    %c0_259 = arith.constant 0 : index
    %459 = vector.load %arg15[%c0_258, %c0_259] : memref<8x32xf32, #tpu.memory_space<vmem>>, vector<8x32xf32>
    %460 = arith.index_cast %457 : i32 to index
    %c0_260 = arith.constant 0 : index
    %461 = vector.load %arg13[%460, %c0_260] : memref<64x128xf32, #tpu.memory_space<vmem>>, vector<8x128xf32>
    %cst_261 = arith.constant dense<0.000000e+00> : vector<8x128xf32>
    %462 = tpu.matmul %458, %269, %cst_261 {dimension_numbers = #tpu.dot_dimension_numbers<[1], [0], [0], [1], [0, 0, 1, 1], [], []>} : vector<8x32xf32>, vector<32x128xf32>, vector<8x128xf32> -> vector<8x128xf32>
    %463 = arith.addf %461, %462 : vector<8x128xf32>
    %464 = arith.negf %463 : vector<8x128xf32>
    %465 = math.exp %464 : vector<8x128xf32>
    %cst_262 = arith.constant 1.000000e+00 : f32
    %466 = vector.broadcast %cst_262 : f32 to vector<8x128xf32>
    %467 = arith.addf %466, %465 : vector<8x128xf32>
    %468 = arith.divf %466, %467 : vector<8x128xf32>
    %469 = math.tanh %463 : vector<8x128xf32>
    %470 = arith.select %4, %468, %469 : vector<8x128xi1>, vector<8x128xf32>
    %471 = vector.extract_strided_slice %470 {offsets = [0, 0], sizes = [8, 32], strides = [1, 1]} : vector<8x128xf32> to vector<8x32xf32>
    %472 = vector.extract_strided_slice %470 {offsets = [0, 32], sizes = [8, 32], strides = [1, 1]} : vector<8x128xf32> to vector<8x32xf32>
    %473 = vector.extract_strided_slice %470 {offsets = [0, 64], sizes = [8, 32], strides = [1, 1]} : vector<8x128xf32> to vector<8x32xf32>
    %474 = vector.extract_strided_slice %470 {offsets = [0, 96], sizes = [8, 32], strides = [1, 1]} : vector<8x128xf32> to vector<8x32xf32>
    %475 = arith.mulf %472, %459 : vector<8x32xf32>
    %476 = arith.mulf %471, %474 : vector<8x32xf32>
    %477 = arith.addf %475, %476 : vector<8x32xf32>
    %478 = math.tanh %477 : vector<8x32xf32>
    %479 = arith.mulf %473, %478 : vector<8x32xf32>
    %c0_263 = arith.constant 0 : index
    %c0_264 = arith.constant 0 : index
    %480 = vector.load %arg15[%c0_263, %c0_264] : memref<8x32xf32, #tpu.memory_space<vmem>>, vector<8x32xf32>
    tpu.vector_store %arg15[%c0_263, %c0_264], %477 {strides = array<i32>} : memref<8x32xf32, #tpu.memory_space<vmem>>, vector<8x32xf32>,
    %c0_265 = arith.constant 0 : index
    %c0_266 = arith.constant 0 : index
    %481 = vector.load %arg14[%c0_265, %c0_266] : memref<8x32xf32, #tpu.memory_space<vmem>>, vector<8x32xf32>
    tpu.vector_store %arg14[%c0_265, %c0_266], %479 {strides = array<i32>} : memref<8x32xf32, #tpu.memory_space<vmem>>, vector<8x32xf32>,
    %482 = arith.index_cast %457 : i32 to index
    %c0_267 = arith.constant 0 : index
    %483 = vector.load %arg12[%482, %c0_267] : memref<64x32xf32, #tpu.memory_space<vmem>>, vector<8x32xf32>
    tpu.vector_store %arg12[%482, %c0_267], %479 {strides = array<i32>} : memref<64x32xf32, #tpu.memory_space<vmem>>, vector<8x32xf32>,
    %c7_i32_268 = arith.constant 7 : i32
    %c1_i32_269 = arith.constant 1 : i32
    %484 = arith.muli %c7_i32_268, %c1_i32_269 : i32
    %c0_i32_270 = arith.constant 0 : i32
    %485 = arith.addi %c0_i32_270, %484 : i32
    %c8_i32_271 = arith.constant 8 : i32
    %486 = arith.muli %485, %c8_i32_271 : i32
    %487 = tpu.assume_multiple %486, 8 : i32
    %c0_272 = arith.constant 0 : index
    %c0_273 = arith.constant 0 : index
    %488 = vector.load %arg14[%c0_272, %c0_273] : memref<8x32xf32, #tpu.memory_space<vmem>>, vector<8x32xf32>
    %c0_274 = arith.constant 0 : index
    %c0_275 = arith.constant 0 : index
    %489 = vector.load %arg15[%c0_274, %c0_275] : memref<8x32xf32, #tpu.memory_space<vmem>>, vector<8x32xf32>
    %490 = arith.index_cast %487 : i32 to index
    %c0_276 = arith.constant 0 : index
    %491 = vector.load %arg13[%490, %c0_276] : memref<64x128xf32, #tpu.memory_space<vmem>>, vector<8x128xf32>
    %cst_277 = arith.constant dense<0.000000e+00> : vector<8x128xf32>
    %492 = tpu.matmul %488, %269, %cst_277 {dimension_numbers = #tpu.dot_dimension_numbers<[1], [0], [0], [1], [0, 0, 1, 1], [], []>} : vector<8x32xf32>, vector<32x128xf32>, vector<8x128xf32> -> vector<8x128xf32>
    %493 = arith.addf %491, %492 : vector<8x128xf32>
    %494 = arith.negf %493 : vector<8x128xf32>
    %495 = math.exp %494 : vector<8x128xf32>
    %cst_278 = arith.constant 1.000000e+00 : f32
    %496 = vector.broadcast %cst_278 : f32 to vector<8x128xf32>
    %497 = arith.addf %496, %495 : vector<8x128xf32>
    %498 = arith.divf %496, %497 : vector<8x128xf32>
    %499 = math.tanh %493 : vector<8x128xf32>
    %500 = arith.select %4, %498, %499 : vector<8x128xi1>, vector<8x128xf32>
    %501 = vector.extract_strided_slice %500 {offsets = [0, 0], sizes = [8, 32], strides = [1, 1]} : vector<8x128xf32> to vector<8x32xf32>
    %502 = vector.extract_strided_slice %500 {offsets = [0, 32], sizes = [8, 32], strides = [1, 1]} : vector<8x128xf32> to vector<8x32xf32>
    %503 = vector.extract_strided_slice %500 {offsets = [0, 64], sizes = [8, 32], strides = [1, 1]} : vector<8x128xf32> to vector<8x32xf32>
    %504 = vector.extract_strided_slice %500 {offsets = [0, 96], sizes = [8, 32], strides = [1, 1]} : vector<8x128xf32> to vector<8x32xf32>
    %505 = arith.mulf %502, %489 : vector<8x32xf32>
    %506 = arith.mulf %501, %504 : vector<8x32xf32>
    %507 = arith.addf %505, %506 : vector<8x32xf32>
    %508 = math.tanh %507 : vector<8x32xf32>
    %509 = arith.mulf %503, %508 : vector<8x32xf32>
    %c0_279 = arith.constant 0 : index
    %c0_280 = arith.constant 0 : index
    %510 = vector.load %arg15[%c0_279, %c0_280] : memref<8x32xf32, #tpu.memory_space<vmem>>, vector<8x32xf32>
    tpu.vector_store %arg15[%c0_279, %c0_280], %507 {strides = array<i32>} : memref<8x32xf32, #tpu.memory_space<vmem>>, vector<8x32xf32>,
    %c0_281 = arith.constant 0 : index
    %c0_282 = arith.constant 0 : index
    %511 = vector.load %arg14[%c0_281, %c0_282] : memref<8x32xf32, #tpu.memory_space<vmem>>, vector<8x32xf32>
    tpu.vector_store %arg14[%c0_281, %c0_282], %509 {strides = array<i32>} : memref<8x32xf32, #tpu.memory_space<vmem>>, vector<8x32xf32>,
    %512 = arith.index_cast %487 : i32 to index
    %c0_283 = arith.constant 0 : index
    %513 = vector.load %arg12[%512, %c0_283] : memref<64x32xf32, #tpu.memory_space<vmem>>, vector<8x32xf32>
    tpu.vector_store %arg12[%512, %c0_283], %509 {strides = array<i32>} : memref<64x32xf32, #tpu.memory_space<vmem>>, vector<8x32xf32>,
    %c8_i32_284 = arith.constant 8 : i32
    %c0_285 = arith.constant 0 : index
    %c0_286 = arith.constant 0 : index
    %514 = vector.load %arg12[%c0_285, %c0_286] : memref<64x32xf32, #tpu.memory_space<vmem>>, vector<64x32xf32>
    %c0_287 = arith.constant 0 : index
    %c0_288 = arith.constant 0 : index
    %515 = vector.load %arg7[%c0_287, %c0_288] : memref<32x32xf32, #tpu.memory_space<vmem>>, vector<32x32xf32>
    %cst_289 = arith.constant dense<0.000000e+00> : vector<64x32xf32>
    %516 = tpu.matmul %514, %515, %cst_289 {dimension_numbers = #tpu.dot_dimension_numbers<[1], [0], [0], [1], [0, 0, 1, 1], [], []>} : vector<64x32xf32>, vector<32x32xf32>, vector<64x32xf32> -> vector<64x32xf32>
    %c0_290 = arith.constant 0 : index
    %c0_291 = arith.constant 0 : index
    %517 = vector.load %arg8[%c0_290, %c0_291] : memref<1x32xf32, #tpu.memory_space<vmem>>, vector<1x32xf32>
    %518 = vector.broadcast %517 : vector<1x32xf32> to vector<64x32xf32>
    %519 = arith.addf %516, %518 : vector<64x32xf32>
    %cst_292 = arith.constant 0.000000e+00 : f32
    %520 = vector.broadcast %cst_292 : f32 to vector<64x32xf32>
    %521 = arith.maximumf %519, %520 : vector<64x32xf32>
    %c0_293 = arith.constant 0 : index
    %c0_294 = arith.constant 0 : index
    %522 = vector.load %arg9[%c0_293, %c0_294] : memref<32x128xf32, #tpu.memory_space<vmem>>, vector<32x128xf32>
    %cst_295 = arith.constant dense<0.000000e+00> : vector<64x128xf32>
    %523 = tpu.matmul %521, %522, %cst_295 {dimension_numbers = #tpu.dot_dimension_numbers<[1], [0], [0], [1], [0, 0, 1, 1], [], []>} : vector<64x32xf32>, vector<32x128xf32>, vector<64x128xf32> -> vector<64x128xf32>
    %c0_296 = arith.constant 0 : index
    %c0_297 = arith.constant 0 : index
    %524 = vector.load %arg10[%c0_296, %c0_297] : memref<1x128xf32, #tpu.memory_space<vmem>>, vector<1x128xf32>
    %525 = vector.broadcast %524 : vector<1x128xf32> to vector<64x128xf32>
    %526 = arith.addf %523, %525 : vector<64x128xf32>
    %527 = vector.shape_cast %526 : vector<64x128xf32> to vector<8x8x128xf32>
    %c0_298 = arith.constant 0 : index
    %c0_299 = arith.constant 0 : index
    %c0_300 = arith.constant 0 : index
    %528 = vector.load %arg11[%c0_298, %c0_299, %c0_300] : memref<8x8x128xf32, #tpu.memory_space<vmem>>, vector<8x8x128xf32>
    tpu.vector_store %arg11[%c0_298, %c0_299, %c0_300], %527 {strides = array<i32>} : memref<8x8x128xf32, #tpu.memory_space<vmem>>, vector<8x8x128xf32>,
    return
  }
  func.func @transform_0(%arg0: i32) -> (i32, i32, i32) {
    %c0_i32 = arith.constant 0 : i32
    %c0_i32_0 = arith.constant 0 : i32
    %c0_i32_1 = arith.constant 0 : i32
    return %c0_i32, %arg0, %c0_i32_0 : i32, i32, i32
  }
  func.func @transform_1(%arg0: i32) -> (i32, i32) {
    %c0_i32 = arith.constant 0 : i32
    %c0_i32_0 = arith.constant 0 : i32
    %c0_i32_1 = arith.constant 0 : i32
    return %c0_i32, %c0_i32_0 : i32, i32
  }
  func.func @transform_2(%arg0: i32) -> (i32, i32) {
    %c0_i32 = arith.constant 0 : i32
    %c0_i32_0 = arith.constant 0 : i32
    %c0_i32_1 = arith.constant 0 : i32
    return %c0_i32, %c0_i32_0 : i32, i32
  }
  func.func @transform_3(%arg0: i32) -> (i32, i32, i32) {
    %c0_i32 = arith.constant 0 : i32
    %c0_i32_0 = arith.constant 0 : i32
    %c0_i32_1 = arith.constant 0 : i32
    %c0_i32_2 = arith.constant 0 : i32
    return %c0_i32, %c0_i32_0, %c0_i32_1 : i32, i32, i32
  }
  func.func @transform_4(%arg0: i32) -> (i32, i32, i32) {
    %c0_i32 = arith.constant 0 : i32
    %c0_i32_0 = arith.constant 0 : i32
    %c0_i32_1 = arith.constant 0 : i32
    %c0_i32_2 = arith.constant 0 : i32
    return %c0_i32, %c0_i32_0, %c0_i32_1 : i32, i32, i32
  }
  func.func @transform_5(%arg0: i32) -> (i32, i32, i32) {
    %c0_i32 = arith.constant 0 : i32
    %c0_i32_0 = arith.constant 0 : i32
    %c0_i32_1 = arith.constant 0 : i32
    %c0_i32_2 = arith.constant 0 : i32
    return %c0_i32, %c0_i32_0, %c0_i32_1 : i32, i32, i32
  }
  func.func @transform_6(%arg0: i32) -> (i32, i32) {
    %c0_i32 = arith.constant 0 : i32
    %c0_i32_0 = arith.constant 0 : i32
    %c0_i32_1 = arith.constant 0 : i32
    return %c0_i32, %c0_i32_0 : i32, i32
  }
  func.func @transform_7(%arg0: i32) -> (i32, i32) {
    %c0_i32 = arith.constant 0 : i32
    %c0_i32_0 = arith.constant 0 : i32
    %c0_i32_1 = arith.constant 0 : i32
    return %c0_i32, %c0_i32_0 : i32, i32
  }
  func.func @transform_8(%arg0: i32) -> (i32, i32) {
    %c0_i32 = arith.constant 0 : i32
    %c0_i32_0 = arith.constant 0 : i32
    %c0_i32_1 = arith.constant 0 : i32
    return %c0_i32, %c0_i32_0 : i32, i32
  }
  func.func @transform_9(%arg0: i32) -> (i32, i32) {
    %c0_i32 = arith.constant 0 : i32
    %c0_i32_0 = arith.constant 0 : i32
    %c0_i32_1 = arith.constant 0 : i32
    return %c0_i32, %c0_i32_0 : i32, i32
  }
  func.func @transform_10(%arg0: i32) -> (i32, i32, i32) {
    %c0_i32 = arith.constant 0 : i32
    %c0_i32_0 = arith.constant 0 : i32
    %c0_i32_1 = arith.constant 0 : i32
    return %c0_i32, %arg0, %c0_i32_0 : i32, i32, i32
  }
}

</mosaic_0001>

<bundles_post_ra>
// kernel: tpu_custom_call.1
= control target key start
LH: loop header
LB: loop body
LE: loop exit
PB: predicated region body
PF: predicated region fallthrough
CT: control target
= control target key end

     0   :  { %15 = vsyncpa [#allocation7], 0  ;;  %s4159_s0 = inlined_call_operand.hbm [shape: f32[8,8,32], index: 0, kind: input, shape index: {}]   ;;  %s4160_s1 = inlined_call_operand.hbm [shape: f32[32,128], index: 1, kind: input, shape index: {}]   ;;  %s4161_s2 = inlined_call_operand.vmem [shape: f32[1,128], index: 2, kind: input, shape index: {}]   ;;  %s4162_s3 = inlined_call_operand.hbm [shape: f32[1,32,128], index: 3, kind: input, shape index: {}]   ;;  %s4163_s4 = inlined_call_operand.vmem [shape: f32[1,1,128], index: 4, kind: input, shape index: {}]   ;;  %s4164_s5 = inlined_call_operand.hbm [shape: f32[2,32,128], index: 5, kind: input, shape index: {}]   ;;  %s4165_s6 = inlined_call_operand.hbm [shape: f32[32,32], index: 6, kind: input, shape index: {}]   ;;  %s4166_s7 = inlined_call_operand.vmem [shape: f32[1,32], index: 7, kind: input, shape index: {}]   ;;  %s4167_s8 = inlined_call_operand.hbm [shape: f32[32,128], index: 8, kind: input, shape index: {}]   ;;  %s4168_s9 = inlined_call_operand.vmem [shape: f32[1,128], index: 9, kind: input, shape index: {}]   ;;  %s4169_s10 = inlined_call_operand.hbm [shape: f32[8,8,128], index: 10, kind: output, shape index: {}]  }
   0x1   :  { %16 = vsyncpa [#allocation10], 0 }
   0x2   :  { %17 = vsyncpa [#allocation13], 0 }
   0x3   :  { %18 = vsyncpa [#allocation16], 0 }
   0x4   :  { %19 = vsyncpa [#allocation8], 0  ;;  %s3546_s13 = smov [#allocation9]   ;;  %s3547_s15 = smov [#allocation12]  }
   0x5   :  { %s37_s14 = sshll.u32 %s3546_s13, 4  ;;  %s65_s16 = sshll.u32 %s3547_s15, 4  ;;  %s38_s14 = int_to_ptr.vmem [resolvable:$true] %s37_s14  ;;  %s3616_s16 = int_to_ptr.vmem [resolvable:$true] %s65_s16 }
   0x6   :  { %s3382_s19 = scalar_lea.hbm %s4160_s1, 512 }
   0x7   :  { %p3383_p0 = scmp.ne.s32.totalorder %s4160_s1, %s3382_s19  ;;  %p3386_p1 = scmp.lt.u32.totalorder %s3382_s19, %s4160_s1 }
   0x9   :  { %p3388_p2 = pnand %p3386_p1, %p3383_p0 }
   0xb   :  { %3391 = shalt.err (!%p3388_p2)
}
   0xc   :  { %s3392_s24 = scalar_lea.vmem %s38_s14, 512  ;;  %p3397_p4 = scmp.lt.s32.totalorder %s38_s14, %s38_s14 }
   0xd   :  { %p3393_p3 = scmp.ne.s32.totalorder %s38_s14, %s3392_s24  ;;  %p3398_p5 = scmp.lt.s32.totalorder %s3392_s24, %s3392_s24 }
   0xf   :  { %p3399_p6 = por %p3398_p5, %p3397_p4 }
  0x11   :  { %p3400_p7 = pnand %p3399_p6, %p3393_p3 }
  0x13   :  { %3403 = shalt.err (!%p3400_p7)
}
  0x14   :  { %s3548_s25 = smov 128   ;;  %s3549_s26 = smov 8  }
  0x15   :  { %43 = dma.hbm_to_vmem [thread:$0]  %s4160_s1, 512, %s38_s14, [#allocation10], %s3548_s25, %s3548_s25, %s3549_s26  }
  0x16   :  { %s3404_s11 = scalar_lea.hbm %s4164_s5, 1024 }
  0x17   :  { %p3405_p8 = scmp.ne.s32.totalorder %s4164_s5, %s3404_s11  ;;  %p3408_p9 = scmp.lt.u32.totalorder %s3404_s11, %s4164_s5 }
  0x19   :  { %p3410_p10 = pnand %p3408_p9, %p3405_p8 }
  0x1b   :  { %3413 = shalt.err (!%p3410_p10)
}
  0x1c   :  { %s3414_s18 = scalar_lea.vmem %s3616_s16, 1024  ;;  %p3419_p12 = scmp.lt.s32.totalorder %s3616_s16, %s3616_s16 }
  0x1d   :  { %p3415_p11 = scmp.ne.s32.totalorder %s3616_s16, %s3414_s18  ;;  %p3420_p13 = scmp.lt.s32.totalorder %s3414_s18, %s3414_s18 }
  0x1f   :  { %p3421_p0 = por %p3420_p13, %p3419_p12 }
  0x21   :  { %p3422_p1 = pnand %p3421_p0, %p3415_p11 }
  0x23   :  { %3425 = shalt.err (!%p3422_p1)
}
  0x24   :  { %71 = dma.hbm_to_vmem [thread:$0]  %s4164_s5, 1024, %s3616_s16, [#allocation13], %s3548_s25, %s3548_s25, %s3549_s26  }
  0x25   :  { %s3550_s19 = smov [#allocation6]   ;;  %s3551_s21 = smov [#allocation11]  }
  0x26   :  { %s25_s20 = sshll.u32 %s3550_s19, 4  ;;  %s51_s22 = sshll.u32 %s3551_s21, 4  ;;  %s26_s20 = int_to_ptr.vmem [resolvable:$true] %s25_s20  ;;  %s3653_s22 = int_to_ptr.vmem [resolvable:$true] %s51_s22 }
  0x27   :  { %s3426_s27 = scalar_lea.hbm %s4159_s0, 1024 }
  0x28   :  { %p3427_p2 = scmp.ne.s32.totalorder %s4159_s0, %s3426_s27  ;;  %p3430_p3 = scmp.lt.u32.totalorder %s3426_s27, %s4159_s0 }
  0x2a   :  { %p3432_p4 = pnand %p3430_p3, %p3427_p2 }
  0x2c   :  { %3435 = shalt.err (!%p3432_p4)
}
  0x2d   :  { %s3436_s5 = scalar_lea.vmem %s26_s20, 1024  ;;  %p3441_p6 = scmp.lt.s32.totalorder %s26_s20, %s26_s20 }
  0x2e   :  { %p3437_p5 = scmp.ne.s32.totalorder %s26_s20, %s3436_s5  ;;  %p3442_p7 = scmp.lt.s32.totalorder %s3436_s5, %s3436_s5 }
  0x30   :  { %p3443_p8 = por %p3442_p7, %p3441_p6 }
  0x32   :  { %p3444_p9 = pnand %p3443_p8, %p3437_p5 }
  0x34   :  { %3447 = shalt.err (!%p3444_p9)
}
  0x35   :  { %31 = dma.hbm_to_vmem [thread:$0]  %s4159_s0, 1024, %s26_s20, [#allocation7], %s3548_s25, %s3548_s25, %s3549_s26  }
  0x36   :  { %s3448_s17 = scalar_lea.hbm %s4162_s3, 512 }
  0x37   :  { %p3449_p10 = scmp.ne.s32.totalorder %s4162_s3, %s3448_s17  ;;  %p3452_p11 = scmp.lt.u32.totalorder %s3448_s17, %s4162_s3 }
  0x39   :  { %p3454_p12 = pnand %p3452_p11, %p3449_p10 }
  0x3b   :  { %3457 = shalt.err (!%p3454_p12)
}
  0x3c   :  { %s3458_s21 = scalar_lea.vmem %s3653_s22, 512  ;;  %p3463_p0 = scmp.lt.s32.totalorder %s3653_s22, %s3653_s22 }
  0x3d   :  { %p3459_p13 = scmp.ne.s32.totalorder %s3653_s22, %s3458_s21  ;;  %p3464_p1 = scmp.lt.s32.totalorder %s3458_s21, %s3458_s21 }
  0x3f   :  { %p3465_p2 = por %p3464_p1, %p3463_p0 }
  0x41   :  { %p3466_p3 = pnand %p3465_p2, %p3459_p13 }
  0x43   :  { %3469 = shalt.err (!%p3466_p3)
}
  0x44   :  { %57 = dma.hbm_to_vmem [thread:$0]  %s4162_s3, 512, %s3653_s22, [#allocation10], %s3548_s25, %s3548_s25, %s3549_s26  }
  0x45   :  { %s3552_s23 = smov [#allocation14]   ;;  %s3553_s27 = smov [#allocation15]  }
  0x46   :  { %s77_s24 = sshll.u32 %s3552_s23, 4  ;;  %s91_s28 = sshll.u32 %s3553_s27, 4  ;;  %s78_s24 = int_to_ptr.vmem [resolvable:$true] %s77_s24  ;;  %s3690_s28 = int_to_ptr.vmem [resolvable:$true] %s91_s28 }
  0x47   :  { %s3470_s11 = scalar_lea.hbm %s4165_s6, 512 }
  0x48   :  { %p3471_p4 = scmp.ne.s32.totalorder %s4165_s6, %s3470_s11  ;;  %p3474_p5 = scmp.lt.u32.totalorder %s3470_s11, %s4165_s6 }
  0x4a   :  { %p3476_p6 = pnand %p3474_p5, %p3471_p4 }
  0x4c   :  { %3479 = shalt.err (!%p3476_p6)
}
  0x4d   :  { %s3480_s3 = scalar_lea.vmem %s78_s24, 512  ;;  %p3485_p8 = scmp.lt.s32.totalorder %s78_s24, %s78_s24 }
  0x4e   :  { %p3481_p7 = scmp.ne.s32.totalorder %s78_s24, %s3480_s3  ;;  %p3486_p9 = scmp.lt.s32.totalorder %s3480_s3, %s3480_s3 }
  0x50   :  { %p3487_p10 = por %p3486_p9, %p3485_p8 }
  0x52   :  { %p3488_p11 = pnand %p3487_p10, %p3481_p7 }
  0x54   :  { %3491 = shalt.err (!%p3488_p11)
}
  0x55   :  { %83 = dma.hbm_to_vmem [thread:$0]  %s4165_s6, 512, %s78_s24, [#allocation13], %s3548_s25, %s3548_s25, %s3549_s26  }
  0x56   :  { %s3492_s1 = scalar_lea.hbm %s4167_s8, 512 }
  0x57   :  { %p3493_p12 = scmp.ne.s32.totalorder %s4167_s8, %s3492_s1  ;;  %p3496_p13 = scmp.lt.u32.totalorder %s3492_s1, %s4167_s8 }
  0x59   :  { %p3498_p0 = pnand %p3496_p13, %p3493_p12 }
  0x5b   :  { %3501 = shalt.err (!%p3498_p0)
}
  0x5c   :  { %s3502_s20 = scalar_lea.vmem %s3690_s28, 512  ;;  %p3507_p2 = scmp.lt.s32.totalorder %s3690_s28, %s3690_s28 }
  0x5d   :  { %p3503_p1 = scmp.ne.s32.totalorder %s3690_s28, %s3502_s20  ;;  %p3508_p3 = scmp.lt.s32.totalorder %s3502_s20, %s3502_s20 }
  0x5f   :  { %p3509_p4 = por %p3508_p3, %p3507_p2 }
  0x61   :  { %p3510_p5 = pnand %p3509_p4, %p3503_p1 }
  0x63   :  { %3513 = shalt.err (!%p3510_p5)
}
  0x64   :  { %97 = dma.hbm_to_vmem [thread:$0]  %s4167_s8, 512, %s3690_s28, [#allocation16], %s3548_s25, %s3548_s25, %s3549_s26  }
  0x65   :  { %3536 = dma.done.wait [#allocation7], 1024  }
  0x66   :  { %3537 = vsyncadd [#allocation7], 4294966272 }
  0x67   :  { %3538 = dma.done.wait [#allocation10], 1024  }
  0x68   :  { %3539 = vsyncadd [#allocation10], 4294966272 }
  0x69   :  { %3540 = dma.done.wait [#allocation13], 1536  }
  0x6a   :  { %3541 = vsyncadd [#allocation13], 4294965760 }
  0x6b   :  { %3542 = dma.done.wait [#allocation16], 512  }
  0x6c   :  { %3543 = vsyncadd [#allocation16], 4294966784  ;;  %vm142_vm0 = vcmask 261120   ;;  %v3554_v0 = vmov 0.0|0.0   ;;  %vm3555_vm1 = vmmov 0   ;;  %v3556_v1 = vmov 0.0  }
  0x6d   :  { %3119 = vmatprep.subr.bf16.mxu1 %v3554_v0  ;;  %2883 = vmatprep.mubr.msk.f32.mxu1 %vm3555_vm1, %v3556_v1  ;;  %284 = vst.msk [vmem:[#allocation4] sm:$0xff] %vm142_vm0, %v3556_v1  ;;  %285 = vst.msk [vmem:[#allocation5] sm:$0xff] %vm142_vm0, %v3556_v1  ;;  %v131_v2 = vld [vmem:[#allocation9] sm:$0xff]  ;;  %v132_v3 = vld [vmem:[#allocation9 + $0x8] sm:$0xff]  ;;  %v118_v27 = vlaneseq  ;;  %s3558_s27 = smov 96   ;;  %s3559_s28 = smov 64  }
  0x6e   :  { %v280_v4 = vld [vmem:[#allocation12] sm:$0xff]  ;;  %v3111_v5 = vpack.c.bf16 %v132_v3, %v131_v2  ;;  %v281_v6 = vld [vmem:[#allocation12 + $0x8] sm:$0xff]  ;;  %v133_v7 = vld [vmem:[#allocation9 + $0x10] sm:$0xff] }
  0x6f   :  { %v134_v8 = vld [vmem:[#allocation9 + $0x18] sm:$0xff]  ;;  %v3734_v9 = vpack.c.bf16 %v281_v6, %v280_v4  ;;  %v123_v11 = vld [vmem:[#allocation6] sm:$0xff]  ;;  %v282_v12 = vld [vmem:[#allocation12 + $0x10] sm:$0xff]  ;;  %v3762_v28 = vand.u32 127, %v118_v27 }
  0x70   :  { %v3115_v10 = vpack.c.bf16 %v134_v8, %v133_v7  ;;  %v283_v13 = vld [vmem:[#allocation12 + $0x18] sm:$0xff]  ;;  %3112 = vmatprep.subr.bf16.mxu0 %v3111_v5  ;;  %2863 = vmatprep.mubr.msk.f32.mxu0 %vm142_vm0, %v123_v11  ;;  %v124_v15 = vld [vmem:[#allocation6 + $0x8] sm:$0xff]  ;;  %v3759_v17 = vld [vmem:[%s4161_s2] ss:$0 sm:$0xff]  ;;  %s3557_s2 = smov 32  }
  0x71   :  { %3114 = vmatpush3.bf16.msra.mxu0 %v3111_v5  ;;  %3121 = vmatpush3.bf16.msra.mxu1 %v3734_v9  ;;  %v3738_v14 = vpack.c.bf16 %v283_v13, %v282_v12  ;;  %vm120_vm2 = vcmp.lt.s32.totalorder %v3762_v28, 96  ;;  %v125_v63 = vld [vmem:[#allocation6 + $0x10] sm:$0xff]  ;;  %v126_v2 = vld [vmem:[#allocation6 + $0x18] sm:$0xff]  ;;  %v127_v3 = vld [vmem:[#allocation6 + $0x20] sm:$0xff] }
  0x72   :  { %3116 = vmatprep.subr.bf16.mxu0 %v3115_v10  ;;  %3122 = vmatprep.subr.bf16.mxu1 %v3554_v0  ;;  %v128_v4 = vld [vmem:[#allocation6 + $0x28] sm:$0xff]  ;;  %v129_v5 = vld [vmem:[#allocation6 + $0x30] sm:$0xff]  ;;  %v130_v6 = vld [vmem:[#allocation6 + $0x38] sm:$0xff] }
  0x74   :  { %v286_v16 = vld [vmem:[#allocation4] sm:$0xff]  ;;  %v287_v32 = vld [vmem:[#allocation5] sm:$0xff] }
  0x75   :  { %3118 = vmatpush3.bf16.msra.mxu0 %v3115_v10  ;;  %3124 = vmatpush3.bf16.msra.mxu1 %v3738_v14 }
  0x76   :  { %3125 = vmatprep.subr.bf16.mxu1 %v3554_v0  ;;  %3131 = vmatprep.subr.bf16.mxu0 %v3554_v0 }
  0x78   :  { %2864 = vmatmul.mubr.msk.f32.vlgmr.msra.gmra.mrb[0].mxu0 %vm142_vm0, %v124_v15  ;;  %2884 = vmatmul.mubr.msk.f32.vlgmr.msra.gmra.mrb[0].mxu1 %vm142_vm0, %v286_v16 }
  0x79   :  { %3127 = vmatpush3.bf16.msra.mxu1 %v3734_v9  ;;  %2894 = vmatprep.mubr.msk.f32.mxu1 %vm3555_vm1, %v3556_v1 }
  0x7a   :  { %3128 = vmatprep.subr.bf16.mxu1 %v3554_v0  ;;  %3133 = vmatpush3.bf16.msra.mxu0 %v3734_v9 }
  0x7b   :  { %3134 = vmatprep.subr.bf16.mxu0 %v3554_v0  ;;  %2866 = vmatprep.mubr.msk.f32.mxu0 %vm142_vm0, %v125_v63 }
  0x7c   :  { %2867 = vmatmul.mubr.msk.f32.gmra.mrb[2].mxu0 %vm142_vm0, %v126_v2 }
  0x7d   :  { %3130 = vmatpush3.bf16.msra.mxu1 %v3738_v14  ;;  %2869 = vmatprep.mubr.msk.f32.mxu0 %vm142_vm0, %v127_v3 }
  0x7e   :  { %3136 = vmatpush3.bf16.msra.mxu0 %v3738_v14  ;;  %3137 = vmatprep.subr.bf16.mxu1 %v3554_v0 }
  0x7f   :  { %3143 = vmatprep.subr.bf16.mxu0 %v3554_v0 }
  0x80   :  { %2870 = vmatmul.mubr.msk.f32.gmra.mrb[4].mxu0 %vm142_vm0, %v128_v4 }
  0x81   :  { %2872 = vmatprep.mubr.msk.f32.mxu0 %vm142_vm0, %v129_v5 }
  0x84   :  { %2873 = vmatmul.mubr.msk.f32.gmra.mrb[6].mxu0 %vm142_vm0, %v130_v6 }
  0x85   :  { %2905 = vmatprep.mubr.msk.f32.mxu0 %vm3555_vm1, %v3556_v1 }
 0x14b   :  { %v2865_v18 = vpop.f32.mrb[0].mxu0  ;;  %v358_v19 = vpop.f32.mrb[0].mxu1 }
 0x14c   :  { %v233_v20 = vpop.f32.mrb[1].mxu0  ;;  %v2885_v21 = vpop.f32.mrb[1].mxu1  ;;  %v239_v46 = vadd.f32 %v2865_v18, %v3759_v17 }
 0x14d   :  { %v234_v22 = vadd.f32 %v3759_v17, %v233_v20 }
 0x14f   :  { %v362_v23 = vadd.f32 %v358_v19, %v234_v22  ;;  %v2868_v12 = vpop.f32.mrb[2].mxu0 }
 0x150   :  { %v243_v13 = vpop.f32.mrb[3].mxu0 }
 0x151   :  { %v2669_v24 = vmul.f32 -1.442695, %v362_v23  ;;  %v244_v22 = vadd.f32 %v3759_v17, %v243_v13 }
 0x153   :  { %3254 = vpow2.f32 %v2669_v24  ;;  %v3802_v15 = vpop.f32.mrb[4].mxu0 }
 0x154   :  { %3256 = vtanh.f32 %v362_v23  ;;  %v3804_v16 = vpop.f32.mrb[5].mxu0 }
 0x157   :  { %v3815_v20 = vpop.f32.mrb[6].mxu0 }
 0x158   :  { %v3817_v21 = vpop.f32.mrb[7].mxu0 }
 0x15d   :  { %v3255_v25 = vpop.eup %3254 }
 0x15e   :  { %v366_v26 = vadd.f32 1.0, %v3255_v25  ;;  %v3257_v29 = vpop.eup %3256 }
 0x160   :  { %3258 = vrcp.f32 %v366_v26 }
 0x16a   :  { %v3259_v30 = vpop.eup %3258 }
 0x16b   :  { %v370_v31 = vsel %vm120_vm2, %v3259_v30, %v3257_v29 }
 0x16c   :  { %377 = vrot.lane.b32.xlu0 %v370_v31, %s3557_s2 }
 0x170   :  { %372 = vrot.lane.b32.xlu0 %v287_v32, %s3557_s2 }
 0x1de   :  { %v378_v33 = vpop.permute.xlu0 %377 }
 0x1df   :  { %v380_v34 = vmul.f32 %v378_v33, %v370_v31 }
 0x1e1   :  { %382 = vrot.lane.b32.xlu1 %v380_v34, %s3557_s2 }
 0x1e2   :  { %v373_v35 = vpop.permute.xlu0 %372 }
 0x1e3   :  { %v375_v36 = vmul.f32 %v373_v35, %v370_v31 }
 0x253   :  { %v383_v37 = vpop.permute.xlu1 %382 }
 0x254   :  { %v385_v38 = vadd.f32 %v383_v37, %v375_v36 }
 0x256   :  { %3260 = vtanh.f32 %v385_v38 }
 0x260   :  { %v3261_v39 = vpop.eup %3260 }
 0x261   :  { %388 = vrot.lane.b32.xlu1 %v3261_v39, %s3557_s2 }
 0x265   :  { %393 = vrot.lane.b32.xlu1 %v385_v38, %s3558_s27 }
 0x2d3   :  { %v389_v40 = vpop.permute.xlu1 %388 }
 0x2d4   :  { %v391_v41 = vmul.f32 %v389_v40, %v370_v31 }
 0x2d6   :  { %398 = vrot.lane.b32.xlu0 %v391_v41, %s3559_s28 }
 0x2d7   :  { %v394_v42 = vpop.permute.xlu1 %393 }
 0x2d8   :  { %396 = vst.msk [vmem:[#allocation5] sm:$0xff] %vm142_vm0, %v394_v42 }
 0x2df   :  { %v404_v43 = vld [vmem:[#allocation5] sm:$0xff] }
 0x2e0   :  { %490 = vrot.lane.b32.xlu1 %v404_v43, %s3557_s2 }
 0x348   :  { %v399_v44 = vpop.permute.xlu0 %398 }
 0x349   :  { %401 = vst.msk [vmem:[#allocation4] sm:$0xff] %vm142_vm0, %v399_v44  ;;  %402 = vst.msk [vmem:[#allocation2] sm:$0xff] %vm142_vm0, %v399_v44 }
 0x350   :  { %v403_v45 = vld [vmem:[#allocation4] sm:$0xff] }
 0x351   :  { %2895 = vmatmul.mubr.msk.f32.vlgmr.msra.gmra.mrb[2].mxu1 %vm142_vm0, %v403_v45 }
 0x352   :  { %3139 = vmatpush3.bf16.msra.mxu1 %v3734_v9  ;;  %2916 = vmatprep.mubr.msk.f32.mxu1 %vm3555_vm1, %v3556_v1  ;;  %v491_v58 = vpop.permute.xlu1 %490 }
 0x353   :  { %3140 = vmatprep.subr.bf16.mxu1 %v3554_v0 }
 0x356   :  { %3142 = vmatpush3.bf16.msra.mxu1 %v3738_v14 }
 0x357   :  { %3149 = vmatprep.subr.bf16.mxu1 %v3554_v0 }
 0x424   :  { %v476_v47 = vpop.f32.mrb[2].mxu1 }
 0x425   :  { %v480_v48 = vadd.f32 %v476_v47, %v239_v46  ;;  %v2896_v49 = vpop.f32.mrb[3].mxu1  ;;  %v249_v46 = vadd.f32 %v2868_v12, %v3759_v17 }
 0x427   :  { %v2671_v50 = vmul.f32 -1.442695, %v480_v48 }
 0x429   :  { %3262 = vpow2.f32 %v2671_v50 }
 0x42a   :  { %3264 = vtanh.f32 %v480_v48 }
 0x433   :  { %v3263_v51 = vpop.eup %3262 }
 0x434   :  { %v484_v52 = vadd.f32 1.0, %v3263_v51  ;;  %v3265_v53 = vpop.eup %3264 }
 0x436   :  { %3266 = vrcp.f32 %v484_v52 }
 0x440   :  { %v3267_v54 = vpop.eup %3266 }
 0x441   :  { %v488_v55 = vsel %vm120_vm2, %v3267_v54, %v3265_v53 }
 0x442   :  { %495 = vrot.lane.b32.xlu0 %v488_v55, %s3557_s2  ;;  %v493_v59 = vmul.f32 %v491_v58, %v488_v55 }
 0x4b4   :  { %v496_v56 = vpop.permute.xlu0 %495 }
 0x4b5   :  { %v498_v57 = vmul.f32 %v496_v56, %v488_v55 }
 0x4b7   :  { %500 = vrot.lane.b32.xlu0 %v498_v57, %s3557_s2 }
 0x529   :  { %v501_v60 = vpop.permute.xlu0 %500 }
 0x52a   :  { %v503_v61 = vadd.f32 %v501_v60, %v493_v59 }
 0x52c   :  { %3268 = vtanh.f32 %v503_v61 }
 0x536   :  { %v3269_v62 = vpop.eup %3268 }
 0x537   :  { %506 = vrot.lane.b32.xlu1 %v3269_v62, %s3557_s2 }
 0x53b   :  { %511 = vrot.lane.b32.xlu1 %v503_v61, %s3558_s27 }
 0x5a9   :  { %v507_v7 = vpop.permute.xlu1 %506 }
 0x5aa   :  { %v509_v8 = vmul.f32 %v507_v7, %v488_v55  ;;  %v254_v7 = vadd.f32 %v3759_v17, %v3804_v16 }
 0x5ac   :  { %516 = vrot.lane.b32.xlu0 %v509_v8, %s3559_s28 }
 0x5ad   :  { %v512_v10 = vpop.permute.xlu1 %511 }
 0x5ae   :  { %514 = vst.msk [vmem:[#allocation5] sm:$0xff] %vm142_vm0, %v512_v10 }
 0x5b5   :  { %v523_v11 = vld [vmem:[#allocation5] sm:$0xff] }
 0x5b6   :  { %609 = vrot.lane.b32.xlu1 %v523_v11, %s3557_s2 }
 0x61e   :  { %v517_v18 = vpop.permute.xlu0 %516 }
 0x61f   :  { %519 = vst.msk [vmem:[#allocation4] sm:$0xff] %vm142_vm0, %v517_v18  ;;  %521 = vst.msk [vmem:[#allocation2 + $0x8] sm:$0xff] %vm142_vm0, %v517_v18 }
 0x626   :  { %v522_v19 = vld [vmem:[#allocation4] sm:$0xff] }
 0x627   :  { %2906 = vmatmul.mubr.msk.f32.vlgmr.msra.gmra.mrb[8].mxu0 %vm142_vm0, %v522_v19 }
 0x628   :  { %3145 = vmatpush3.bf16.msra.mxu0 %v3734_v9  ;;  %2927 = vmatprep.mubr.msk.f32.mxu0 %vm3555_vm1, %v3556_v1  ;;  %v610_v35 = vpop.permute.xlu1 %609 }
 0x629   :  { %3146 = vmatprep.subr.bf16.mxu0 %v3554_v0 }
 0x62c   :  { %3148 = vmatpush3.bf16.msra.mxu0 %v3738_v14 }
 0x62d   :  { %3155 = vmatprep.subr.bf16.mxu0 %v3554_v0 }
 0x6fa   :  { %v595_v23 = vpop.f32.mrb[8].mxu0 }
 0x6fb   :  { %v599_v24 = vadd.f32 %v595_v23, %v244_v22  ;;  %v2907_v25 = vpop.f32.mrb[9].mxu0 }
 0x6fd   :  { %v2673_v26 = vmul.f32 -1.442695, %v599_v24 }
 0x6ff   :  { %3270 = vpow2.f32 %v2673_v26 }
 0x700   :  { %3272 = vtanh.f32 %v599_v24 }
 0x709   :  { %v3271_v27 = vpop.eup %3270 }
 0x70a   :  { %v603_v29 = vadd.f32 1.0, %v3271_v27  ;;  %v3273_v30 = vpop.eup %3272 }
 0x70c   :  { %3274 = vrcp.f32 %v603_v29 }
 0x716   :  { %v3275_v31 = vpop.eup %3274 }
 0x717   :  { %v607_v32 = vsel %vm120_vm2, %v3275_v31, %v3273_v30 }
 0x718   :  { %614 = vrot.lane.b32.xlu0 %v607_v32, %s3557_s2  ;;  %v612_v36 = vmul.f32 %v610_v35, %v607_v32 }
 0x78a   :  { %v615_v33 = vpop.permute.xlu0 %614 }
 0x78b   :  { %v617_v34 = vmul.f32 %v615_v33, %v607_v32 }
 0x78d   :  { %619 = vrot.lane.b32.xlu0 %v617_v34, %s3557_s2 }
 0x7ff   :  { %v620_v37 = vpop.permute.xlu0 %619 }
 0x800   :  { %v622_v38 = vadd.f32 %v620_v37, %v612_v36  ;;  %v259_v37 = vadd.f32 %v3802_v15, %v3759_v17 }
 0x802   :  { %3276 = vtanh.f32 %v622_v38 }
 0x80c   :  { %v3277_v39 = vpop.eup %3276 }
 0x80d   :  { %625 = vrot.lane.b32.xlu1 %v3277_v39, %s3557_s2 }
 0x811   :  { %630 = vrot.lane.b32.xlu1 %v622_v38, %s3558_s27 }
 0x87f   :  { %v626_v40 = vpop.permute.xlu1 %625 }
 0x880   :  { %v628_v41 = vmul.f32 %v626_v40, %v607_v32 }
 0x882   :  { %635 = vrot.lane.b32.xlu0 %v628_v41, %s3559_s28 }
 0x883   :  { %v631_v42 = vpop.permute.xlu1 %630 }
 0x884   :  { %633 = vst.msk [vmem:[#allocation5] sm:$0xff] %vm142_vm0, %v631_v42 }
 0x88b   :  { %v642_v43 = vld [vmem:[#allocation5] sm:$0xff] }
 0x88c   :  { %728 = vrot.lane.b32.xlu1 %v642_v43, %s3557_s2 }
 0x8f4   :  { %v636_v44 = vpop.permute.xlu0 %635 }
 0x8f5   :  { %638 = vst.msk [vmem:[#allocation4] sm:$0xff] %vm142_vm0, %v636_v44  ;;  %640 = vst.msk [vmem:[#allocation2 + $0x10] sm:$0xff] %vm142_vm0, %v636_v44 }
 0x8fc   :  { %v641_v45 = vld [vmem:[#allocation4] sm:$0xff] }
 0x8fd   :  { %2917 = vmatmul.mubr.msk.f32.vlgmr.msra.gmra.mrb[4].mxu1 %vm142_vm0, %v641_v45 }
 0x8fe   :  { %3151 = vmatpush3.bf16.msra.mxu1 %v3734_v9  ;;  %2938 = vmatprep.mubr.msk.f32.mxu1 %vm3555_vm1, %v3556_v1  ;;  %v729_v58 = vpop.permute.xlu1 %728 }
 0x8ff   :  { %3152 = vmatprep.subr.bf16.mxu1 %v3554_v0 }
 0x902   :  { %3154 = vmatpush3.bf16.msra.mxu1 %v3738_v14 }
 0x903   :  { %3161 = vmatprep.subr.bf16.mxu1 %v3554_v0 }
 0x9d0   :  { %v714_v47 = vpop.f32.mrb[4].mxu1 }
 0x9d1   :  { %v718_v48 = vadd.f32 %v714_v47, %v249_v46  ;;  %v2918_v49 = vpop.f32.mrb[5].mxu1 }
 0x9d3   :  { %v2675_v50 = vmul.f32 -1.442695, %v718_v48 }
 0x9d5   :  { %3278 = vpow2.f32 %v2675_v50 }
 0x9d6   :  { %3280 = vtanh.f32 %v718_v48 }
 0x9df   :  { %v3279_v51 = vpop.eup %3278 }
 0x9e0   :  { %v722_v52 = vadd.f32 1.0, %v3279_v51  ;;  %v3281_v53 = vpop.eup %3280  ;;  %v1244_v51 = vld [vmem:[#allocation11] sm:$0xff] }
 0x9e2   :  { %3282 = vrcp.f32 %v722_v52  ;;  %v1245_v52 = vld [vmem:[#allocation11 + $0x8] sm:$0xff] }
 0x9ec   :  { %v3283_v54 = vpop.eup %3282 }
 0x9ed   :  { %v726_v55 = vsel %vm120_vm2, %v3283_v54, %v3281_v53  ;;  %v3167_v53 = vpack.c.bf16 %v1245_v52, %v1244_v51 }
 0x9ee   :  { %733 = vrot.lane.b32.xlu0 %v726_v55, %s3557_s2  ;;  %v731_v59 = vmul.f32 %v729_v58, %v726_v55 }
 0xa60   :  { %v734_v56 = vpop.permute.xlu0 %733 }
 0xa61   :  { %v736_v57 = vmul.f32 %v734_v56, %v726_v55 }
 0xa63   :  { %738 = vrot.lane.b32.xlu0 %v736_v57, %s3557_s2 }
 0xad5   :  { %v739_v60 = vpop.permute.xlu0 %738 }
 0xad6   :  { %v741_v61 = vadd.f32 %v739_v60, %v731_v59  ;;  %v1246_v59 = vld [vmem:[#allocation11 + $0x10] sm:$0xff]  ;;  %v1247_v60 = vld [vmem:[#allocation11 + $0x18] sm:$0xff] }
 0xad8   :  { %3284 = vtanh.f32 %v741_v61 }
 0xae2   :  { %v3285_v62 = vpop.eup %3284 }
 0xae3   :  { %744 = vrot.lane.b32.xlu1 %v3285_v62, %s3557_s2 }
 0xae7   :  { %749 = vrot.lane.b32.xlu1 %v741_v61, %s3558_s27  ;;  %v3171_v61 = vpack.c.bf16 %v1247_v60, %v1246_v59  ;;  %v1396_v59 = vld [vmem:[#allocation12 + $0x38] sm:$0xff] }
 0xb55   :  { %v745_v63 = vpop.permute.xlu1 %744 }
 0xb56   :  { %v747_v2 = vmul.f32 %v745_v63, %v726_v55  ;;  %v1236_v63 = vld [vmem:[#allocation2] sm:$0xff] }
 0xb58   :  { %754 = vrot.lane.b32.xlu0 %v747_v2, %s3559_s28  ;;  %v1237_v2 = vld [vmem:[#allocation2 + $0x8] sm:$0xff] }
 0xb59   :  { %v750_v3 = vpop.permute.xlu1 %749 }
 0xb5a   :  { %752 = vst.msk [vmem:[#allocation5] sm:$0xff] %vm142_vm0, %v750_v3  ;;  %v1238_v3 = vld [vmem:[#allocation2 + $0x10] sm:$0xff] }
 0xb61   :  { %v761_v4 = vld [vmem:[#allocation5] sm:$0xff] }
 0xb62   :  { %847 = vrot.lane.b32.xlu1 %v761_v4, %s3557_s2 }
 0xbca   :  { %v755_v5 = vpop.permute.xlu0 %754 }
 0xbcb   :  { %757 = vst.msk [vmem:[#allocation4] sm:$0xff] %vm142_vm0, %v755_v5  ;;  %759 = vst.msk [vmem:[#allocation2 + $0x18] sm:$0xff] %vm142_vm0, %v755_v5 }
 0xbd2   :  { %v760_v6 = vld [vmem:[#allocation4] sm:$0xff]  ;;  %v1239_v4 = vld [vmem:[#allocation2 + $0x18] sm:$0xff] }
 0xbd3   :  { %2928 = vmatmul.mubr.msk.f32.vlgmr.msra.gmra.mrb[10].mxu0 %vm142_vm0, %v760_v6 }
 0xbd4   :  { %3157 = vmatpush3.bf16.msra.mxu0 %v3734_v9  ;;  %2949 = vmatprep.mubr.msk.f32.mxu0 %vm3555_vm1, %v3556_v1  ;;  %v848_v16 = vpop.permute.xlu1 %847 }
 0xbd5   :  { %3158 = vmatprep.subr.bf16.mxu0 %v3554_v0 }
 0xbd8   :  { %3160 = vmatpush3.bf16.msra.mxu0 %v3738_v14 }
 0xbd9   :  { %3168 = vmatprep.subr.bf16.mxu0 %v3167_v53 }
 0xca6   :  { %v833_v8 = vpop.f32.mrb[10].mxu0 }
 0xca7   :  { %v837_v10 = vadd.f32 %v833_v8, %v254_v7  ;;  %v2929_v11 = vpop.f32.mrb[11].mxu0  ;;  %v264_v7 = vadd.f32 %v3759_v17, %v3817_v21 }
 0xca9   :  { %v2677_v12 = vmul.f32 -1.442695, %v837_v10 }
 0xcab   :  { %3286 = vpow2.f32 %v2677_v12 }
 0xcac   :  { %3288 = vtanh.f32 %v837_v10 }
 0xcb5   :  { %v3287_v13 = vpop.eup %3286 }
 0xcb6   :  { %v841_v18 = vadd.f32 1.0, %v3287_v13  ;;  %v3289_v19 = vpop.eup %3288 }
 0xcb8   :  { %3290 = vrcp.f32 %v841_v18 }
 0xcc2   :  { %v3291_v22 = vpop.eup %3290 }
 0xcc3   :  { %v845_v23 = vsel %vm120_vm2, %v3291_v22, %v3289_v19 }
 0xcc4   :  { %852 = vrot.lane.b32.xlu0 %v845_v23, %s3557_s2  ;;  %v850_v26 = vmul.f32 %v848_v16, %v845_v23 }
 0xd36   :  { %v853_v24 = vpop.permute.xlu0 %852 }
 0xd37   :  { %v855_v25 = vmul.f32 %v853_v24, %v845_v23 }
 0xd39   :  { %857 = vrot.lane.b32.xlu0 %v855_v25, %s3557_s2 }
 0xdab   :  { %v858_v27 = vpop.permute.xlu0 %857 }
 0xdac   :  { %v860_v29 = vadd.f32 %v858_v27, %v850_v26 }
 0xdae   :  { %3292 = vtanh.f32 %v860_v29 }
 0xdb8   :  { %v3293_v30 = vpop.eup %3292 }
 0xdb9   :  { %863 = vrot.lane.b32.xlu1 %v3293_v30, %s3557_s2 }
 0xdbd   :  { %868 = vrot.lane.b32.xlu1 %v860_v29, %s3558_s27 }
 0xe2b   :  { %v864_v31 = vpop.permute.xlu1 %863 }
 0xe2c   :  { %v866_v32 = vmul.f32 %v864_v31, %v845_v23 }
 0xe2e   :  { %873 = vrot.lane.b32.xlu0 %v866_v32, %s3559_s28 }
 0xe2f   :  { %v869_v33 = vpop.permute.xlu1 %868 }
 0xe30   :  { %871 = vst.msk [vmem:[#allocation5] sm:$0xff] %vm142_vm0, %v869_v33 }
 0xe37   :  { %v880_v34 = vld [vmem:[#allocation5] sm:$0xff] }
 0xe38   :  { %966 = vrot.lane.b32.xlu1 %v880_v34, %s3557_s2 }
 0xea0   :  { %v874_v35 = vpop.permute.xlu0 %873 }
 0xea1   :  { %876 = vst.msk [vmem:[#allocation4] sm:$0xff] %vm142_vm0, %v874_v35  ;;  %878 = vst.msk [vmem:[#allocation2 + $0x20] sm:$0xff] %vm142_vm0, %v874_v35 }
 0xea8   :  { %v879_v36 = vld [vmem:[#allocation4] sm:$0xff] }
 0xea9   :  { %2939 = vmatmul.mubr.msk.f32.vlgmr.msra.gmra.mrb[6].mxu1 %vm142_vm0, %v879_v36  ;;  %v1240_v5 = vld [vmem:[#allocation2 + $0x20] sm:$0xff] }
 0xeaa   :  { %3163 = vmatpush3.bf16.msra.mxu1 %v3734_v9  ;;  %2960 = vmatprep.mubr.msk.f32.mxu1 %vm3555_vm1, %v3556_v1  ;;  %v967_v15 = vpop.permute.xlu1 %966 }
 0xeab   :  { %3164 = vmatprep.subr.bf16.mxu1 %v3554_v0 }
 0xeae   :  { %3166 = vmatpush3.bf16.msra.mxu1 %v3738_v14 }
 0xeaf   :  { %3175 = vmatprep.subr.bf16.mxu1 %v3554_v0 }
 0xf7c   :  { %v952_v38 = vpop.f32.mrb[6].mxu1 }
 0xf7d   :  { %v956_v39 = vadd.f32 %v952_v38, %v259_v37  ;;  %v2940_v40 = vpop.f32.mrb[7].mxu1 }
 0xf7f   :  { %v2679_v41 = vmul.f32 -1.442695, %v956_v39 }
 0xf81   :  { %3294 = vpow2.f32 %v2679_v41 }
 0xf82   :  { %3296 = vtanh.f32 %v956_v39 }
 0xf8b   :  { %v3295_v42 = vpop.eup %3294 }
 0xf8c   :  { %v960_v43 = vadd.f32 1.0, %v3295_v42  ;;  %v3297_v9 = vpop.eup %3296 }
 0xf8e   :  { %3298 = vrcp.f32 %v960_v43  ;;  %v269_v43 = vadd.f32 %v3815_v20, %v3759_v17 }
 0xf98   :  { %v3299_v44 = vpop.eup %3298 }
 0xf99   :  { %v964_v45 = vsel %vm120_vm2, %v3299_v44, %v3297_v9 }
 0xf9a   :  { %971 = vrot.lane.b32.xlu0 %v964_v45, %s3557_s2  ;;  %v969_v47 = vmul.f32 %v967_v15, %v964_v45 }
0x100c   :  { %v972_v14 = vpop.permute.xlu0 %971 }
0x100d   :  { %v974_v46 = vmul.f32 %v972_v14, %v964_v45 }
0x100f   :  { %976 = vrot.lane.b32.xlu0 %v974_v46, %s3557_s2 }
0x1081   :  { %v977_v48 = vpop.permute.xlu0 %976 }
0x1082   :  { %v979_v49 = vadd.f32 %v977_v48, %v969_v47 }
0x1084   :  { %3300 = vtanh.f32 %v979_v49 }
0x108e   :  { %v3301_v50 = vpop.eup %3300 }
0x108f   :  { %982 = vrot.lane.b32.xlu1 %v3301_v50, %s3557_s2 }
0x1093   :  { %987 = vrot.lane.b32.xlu1 %v979_v49, %s3558_s27 }
0x1101   :  { %v983_v54 = vpop.permute.xlu1 %982 }
0x1102   :  { %v985_v55 = vmul.f32 %v983_v54, %v964_v45 }
0x1104   :  { %992 = vrot.lane.b32.xlu0 %v985_v55, %s3559_s28  ;;  %v1393_v55 = vld [vmem:[#allocation12 + $0x20] sm:$0xff] }
0x1105   :  { %v988_v56 = vpop.permute.xlu1 %987 }
0x1106   :  { %990 = vst.msk [vmem:[#allocation5] sm:$0xff] %vm142_vm0, %v988_v56  ;;  %v1394_v56 = vld [vmem:[#allocation12 + $0x28] sm:$0xff] }
0x110d   :  { %v999_v57 = vld [vmem:[#allocation5] sm:$0xff] }
0x110e   :  { %1085 = vrot.lane.b32.xlu1 %v999_v57, %s3557_s2  ;;  %v3934_v57 = vpack.c.bf16 %v1394_v56, %v1393_v55 }
0x1176   :  { %v993_v58 = vpop.permute.xlu0 %992 }
0x1177   :  { %995 = vst.msk [vmem:[#allocation4] sm:$0xff] %vm142_vm0, %v993_v58  ;;  %997 = vst.msk [vmem:[#allocation2 + $0x28] sm:$0xff] %vm142_vm0, %v993_v58  ;;  %v1395_v58 = vld [vmem:[#allocation12 + $0x30] sm:$0xff] }
0x1178   :  { %v3937_v60 = vpack.c.bf16 %v1396_v59, %v1395_v58 }
0x117e   :  { %v998_v62 = vld [vmem:[#allocation4] sm:$0xff]  ;;  %v1241_v6 = vld [vmem:[#allocation2 + $0x28] sm:$0xff] }
0x117f   :  { %2950 = vmatmul.mubr.msk.f32.vlgmr.msra.gmra.mrb[12].mxu0 %vm142_vm0, %v998_v62 }
0x1180   :  { %3170 = vmatpush3.bf16.msra.mxu0 %v3167_v53  ;;  %2971 = vmatprep.mubr.msk.f32.mxu0 %vm142_vm0, %v1236_v63  ;;  %v1086_v31 = vpop.permute.xlu1 %1085 }
0x1181   :  { %3172 = vmatprep.subr.bf16.mxu0 %v3171_v61 }
0x1184   :  { %3174 = vmatpush3.bf16.msra.mxu0 %v3171_v61 }
0x1185   :  { %3187 = vmatprep.subr.bf16.mxu0 %v3554_v0 }
0x1187   :  { %2972 = vmatmul.mubr.msk.f32.vlgmr.msra.gmra.mrb[14].mxu0 %vm142_vm0, %v1237_v2 }
0x1188   :  { %2974 = vmatprep.mubr.msk.f32.mxu0 %vm142_vm0, %v1238_v3  ;;  %3189 = vmatpush3.bf16.msra.mxu0 %v3934_v57 }
0x1189   :  { %3190 = vmatprep.subr.bf16.mxu0 %v3554_v0 }
0x118b   :  { %2975 = vmatmul.mubr.msk.f32.gmra.mrb[16].mxu0 %vm142_vm0, %v1239_v4 }
0x118c   :  { %2977 = vmatprep.mubr.msk.f32.mxu0 %vm142_vm0, %v1240_v5  ;;  %3192 = vmatpush3.bf16.msra.mxu0 %v3937_v60 }
0x118d   :  { %3199 = vmatprep.subr.bf16.mxu0 %v3554_v0 }
0x118f   :  { %2978 = vmatmul.mubr.msk.f32.gmra.mrb[18].mxu0 %vm142_vm0, %v1241_v6  ;;  %v3968_v6 = vld [vmem:[%s4163_s4] ss:$0 sm:$0xff] }
0x1252   :  { %v1071_v8 = vpop.f32.mrb[12].mxu0 }
0x1253   :  { %v1075_v10 = vadd.f32 %v1071_v8, %v264_v7  ;;  %v2951_v11 = vpop.f32.mrb[13].mxu0 }
0x1255   :  { %v2681_v12 = vmul.f32 -1.442695, %v1075_v10 }
0x1257   :  { %3302 = vpow2.f32 %v2681_v12 }
0x1258   :  { %3304 = vtanh.f32 %v1075_v10 }
0x125a   :  { %v3899_v13 = vpop.f32.mrb[14].mxu0 }
0x125b   :  { %v3901_v18 = vpop.f32.mrb[15].mxu0 }
0x125c   :  { %v1346_v7 = vadd.f32 %v3968_v6, %v3901_v18 }
0x125e   :  { %v3903_v19 = vpop.f32.mrb[16].mxu0 }
0x125f   :  { %v3905_v22 = vpop.f32.mrb[17].mxu0 }
0x1261   :  { %v3303_v23 = vpop.eup %3302 }
0x1262   :  { %v1079_v24 = vadd.f32 1.0, %v3303_v23  ;;  %v3907_v25 = vpop.f32.mrb[18].mxu0  ;;  %v3305_v21 = vpop.eup %3304 }
0x1263   :  { %v3909_v16 = vpop.f32.mrb[19].mxu0 }
0x1264   :  { %3306 = vrcp.f32 %v1079_v24 }
0x126e   :  { %v3307_v26 = vpop.eup %3306 }
0x126f   :  { %v1083_v27 = vsel %vm120_vm2, %v3307_v26, %v3305_v21 }
0x1270   :  { %1090 = vrot.lane.b32.xlu0 %v1083_v27, %s3557_s2  ;;  %v1088_v32 = vmul.f32 %v1086_v31, %v1083_v27 }
0x12e2   :  { %v1091_v29 = vpop.permute.xlu0 %1090 }
0x12e3   :  { %v1093_v30 = vmul.f32 %v1091_v29, %v1083_v27 }
0x12e5   :  { %1095 = vrot.lane.b32.xlu0 %v1093_v30, %s3557_s2 }
0x1357   :  { %v1096_v33 = vpop.permute.xlu0 %1095 }
0x1358   :  { %v1098_v34 = vadd.f32 %v1096_v33, %v1088_v32 }
0x135a   :  { %3308 = vtanh.f32 %v1098_v34 }
0x1364   :  { %v3309_v35 = vpop.eup %3308 }
0x1365   :  { %1101 = vrot.lane.b32.xlu1 %v3309_v35, %s3557_s2 }
0x1369   :  { %1106 = vrot.lane.b32.xlu1 %v1098_v34, %s3558_s27 }
0x13d7   :  { %v1102_v36 = vpop.permute.xlu1 %1101 }
0x13d8   :  { %v1104_v37 = vmul.f32 %v1102_v36, %v1083_v27 }
0x13da   :  { %1111 = vrot.lane.b32.xlu0 %v1104_v37, %s3559_s28 }
0x13db   :  { %v1107_v38 = vpop.permute.xlu1 %1106 }
0x13dc   :  { %1109 = vst.msk [vmem:[#allocation5] sm:$0xff] %vm142_vm0, %v1107_v38 }
0x13e3   :  { %v1118_v39 = vld [vmem:[#allocation5] sm:$0xff] }
0x13e4   :  { %1204 = vrot.lane.b32.xlu1 %v1118_v39, %s3557_s2 }
0x144c   :  { %v1112_v40 = vpop.permute.xlu0 %1111 }
0x144d   :  { %1114 = vst.msk [vmem:[#allocation4] sm:$0xff] %vm142_vm0, %v1112_v40  ;;  %1116 = vst.msk [vmem:[#allocation2 + $0x30] sm:$0xff] %vm142_vm0, %v1112_v40 }
0x1454   :  { %v1117_v41 = vld [vmem:[#allocation4] sm:$0xff]  ;;  %v1242_v42 = vld [vmem:[#allocation2 + $0x30] sm:$0xff] }
0x1455   :  { %2961 = vmatmul.mubr.msk.f32.vlgmr.msra.gmra.mrb[8].mxu1 %vm142_vm0, %v1117_v41  ;;  %2980 = vmatprep.mubr.msk.f32.mxu0 %vm142_vm0, %v1242_v42 }
0x1456   :  { %2991 = vmatprep.mubr.msk.f32.mxu1 %vm3555_vm1, %v3556_v1  ;;  %v1205_v17 = vpop.permute.xlu1 %1204  ;;  %3177 = vmatpush3.bf16.msra.mxu1 %v3934_v57 }
0x1457   :  { %3178 = vmatprep.subr.bf16.mxu1 %v3554_v0 }
0x145a   :  { %3180 = vmatpush3.bf16.msra.mxu1 %v3937_v60 }
0x145b   :  { %3181 = vmatprep.subr.bf16.mxu1 %v3554_v0 }
0x1528   :  { %v1190_v9 = vpop.f32.mrb[8].mxu1 }
0x1529   :  { %v1194_v44 = vadd.f32 %v1190_v9, %v269_v43  ;;  %v2962_v45 = vpop.f32.mrb[9].mxu1  ;;  %v1351_v43 = vadd.f32 %v3899_v13, %v3968_v6 }
0x152b   :  { %v2683_v14 = vmul.f32 -1.442695, %v1194_v44 }
0x152d   :  { %3310 = vpow2.f32 %v2683_v14 }
0x152e   :  { %3312 = vtanh.f32 %v1194_v44 }
0x1537   :  { %v3311_v46 = vpop.eup %3310 }
0x1538   :  { %v1198_v15 = vadd.f32 1.0, %v3311_v46  ;;  %v3313_v47 = vpop.eup %3312 }
0x153a   :  { %3314 = vrcp.f32 %v1198_v15 }
0x1544   :  { %v3315_v48 = vpop.eup %3314 }
0x1545   :  { %v1202_v49 = vsel %vm120_vm2, %v3315_v48, %v3313_v47 }
0x1546   :  { %1209 = vrot.lane.b32.xlu0 %v1202_v49, %s3557_s2  ;;  %v1207_v20 = vmul.f32 %v1205_v17, %v1202_v49 }
0x15b8   :  { %v1210_v50 = vpop.permute.xlu0 %1209 }
0x15b9   :  { %v1212_v51 = vmul.f32 %v1210_v50, %v1202_v49 }
0x15bb   :  { %1214 = vrot.lane.b32.xlu0 %v1212_v51, %s3557_s2 }
0x162d   :  { %v1215_v52 = vpop.permute.xlu0 %1214 }
0x162e   :  { %v1217_v53 = vadd.f32 %v1215_v52, %v1207_v20 }
0x1630   :  { %3316 = vtanh.f32 %v1217_v53 }
0x163a   :  { %v3317_v54 = vpop.eup %3316 }
0x163b   :  { %1220 = vrot.lane.b32.xlu1 %v3317_v54, %s3557_s2 }
0x163f   :  { %1225 = vrot.lane.b32.xlu1 %v1217_v53, %s3558_s27 }
0x16ad   :  { %v1221_v61 = vpop.permute.xlu1 %1220 }
0x16ae   :  { %v1223_v62 = vmul.f32 %v1221_v61, %v1202_v49 }
0x16b0   :  { %1230 = vrot.lane.b32.xlu0 %v1223_v62, %s3559_s28  ;;  %v1356_v62 = vadd.f32 %v3968_v6, %v3905_v22 }
0x16b1   :  { %v1226_v63 = vpop.permute.xlu1 %1225 }
0x16b2   :  { %1228 = vst.msk [vmem:[#allocation5] sm:$0xff] %vm142_vm0, %v1226_v63 }
0x16b3   :  { %1398 = vst.msk [vmem:[#allocation5] sm:$0xff] %vm142_vm0, %v3556_v1 }
0x16ba   :  { %v1400_v2 = vld [vmem:[#allocation5] sm:$0xff] }
0x16bb   :  { %1485 = vrot.lane.b32.xlu1 %v1400_v2, %s3557_s2 }
0x1722   :  { %v1231_v3 = vpop.permute.xlu0 %1230 }
0x1723   :  { %1233 = vst.msk [vmem:[#allocation4] sm:$0xff] %vm142_vm0, %v1231_v3  ;;  %1235 = vst.msk [vmem:[#allocation2 + $0x38] sm:$0xff] %vm142_vm0, %v1231_v3 }
0x1724   :  { %1397 = vst.msk [vmem:[#allocation4] sm:$0xff] %vm142_vm0, %v3556_v1 }
0x172a   :  { %v1243_v4 = vld [vmem:[#allocation2 + $0x38] sm:$0xff] }
0x172b   :  { %2981 = vmatmul.mubr.msk.f32.gmra.mrb[20].mxu0 %vm142_vm0, %v1243_v4  ;;  %v1399_v5 = vld [vmem:[#allocation4] sm:$0xff] }
0x172c   :  { %2992 = vmatmul.mubr.msk.f32.vlgmr.msra.gmra.mrb[10].mxu1 %vm142_vm0, %v1399_v5  ;;  %3013 = vmatprep.mubr.msk.f32.mxu0 %vm3555_vm1, %v3556_v1 }
0x172d   :  { %3183 = vmatpush3.bf16.msra.mxu1 %v3934_v57  ;;  %3002 = vmatprep.mubr.msk.f32.mxu1 %vm3555_vm1, %v3556_v1  ;;  %v1486_v32 = vpop.permute.xlu1 %1485 }
0x172e   :  { %3184 = vmatprep.subr.bf16.mxu1 %v3554_v0 }
0x1731   :  { %3186 = vmatpush3.bf16.msra.mxu1 %v3937_v60 }
0x1732   :  { %3193 = vmatprep.subr.bf16.mxu1 %v3554_v0 }
0x17fe   :  { %v3972_v8 = vpop.f32.mrb[20].mxu0 }
0x17ff   :  { %v3974_v10 = vpop.f32.mrb[21].mxu0  ;;  %v1471_v11 = vpop.f32.mrb[10].mxu1 }
0x1800   :  { %v1475_v12 = vadd.f32 %v1471_v11, %v1346_v7  ;;  %v2993_v23 = vpop.f32.mrb[11].mxu1 }
0x1802   :  { %v2694_v24 = vmul.f32 -1.442695, %v1475_v12 }
0x1804   :  { %3318 = vpow2.f32 %v2694_v24 }
0x1805   :  { %3320 = vtanh.f32 %v1475_v12 }
0x180e   :  { %v3319_v21 = vpop.eup %3318 }
0x180f   :  { %v1479_v26 = vadd.f32 1.0, %v3319_v21  ;;  %v3321_v27 = vpop.eup %3320 }
0x1811   :  { %3322 = vrcp.f32 %v1479_v26 }
0x181b   :  { %v3323_v29 = vpop.eup %3322 }
0x181c   :  { %v1483_v30 = vsel %vm120_vm2, %v3323_v29, %v3321_v27 }
0x181d   :  { %1490 = vrot.lane.b32.xlu0 %v1483_v30, %s3557_s2  ;;  %v1488_v33 = vmul.f32 %v1486_v32, %v1483_v30 }
0x188f   :  { %v1491_v18 = vpop.permute.xlu0 %1490 }
0x1890   :  { %v1493_v31 = vmul.f32 %v1491_v18, %v1483_v30 }
0x1892   :  { %1495 = vrot.lane.b32.xlu0 %v1493_v31, %s3557_s2 }
0x1904   :  { %v1496_v34 = vpop.permute.xlu0 %1495 }
0x1905   :  { %v1498_v35 = vadd.f32 %v1496_v34, %v1488_v33 }
0x1907   :  { %3324 = vtanh.f32 %v1498_v35 }
0x1911   :  { %v3325_v36 = vpop.eup %3324 }
0x1912   :  { %1501 = vrot.lane.b32.xlu1 %v3325_v36, %s3557_s2  ;;  %v1361_v36 = vadd.f32 %v3903_v19, %v3968_v6 }
0x1916   :  { %1506 = vrot.lane.b32.xlu1 %v1498_v35, %s3558_s27 }
0x1984   :  { %v1502_v37 = vpop.permute.xlu1 %1501 }
0x1985   :  { %v1504_v38 = vmul.f32 %v1502_v37, %v1483_v30 }
0x1987   :  { %1511 = vrot.lane.b32.xlu0 %v1504_v38, %s3559_s28 }
0x1988   :  { %v1507_v39 = vpop.permute.xlu1 %1506 }
0x1989   :  { %1509 = vst.msk [vmem:[#allocation5] sm:$0xff] %vm142_vm0, %v1507_v39 }
0x1990   :  { %v1517_v40 = vld [vmem:[#allocation5] sm:$0xff] }
0x1991   :  { %1602 = vrot.lane.b32.xlu1 %v1517_v40, %s3557_s2 }
0x19f9   :  { %v1512_v41 = vpop.permute.xlu0 %1511 }
0x19fa   :  { %1514 = vst.msk [vmem:[#allocation4] sm:$0xff] %vm142_vm0, %v1512_v41  ;;  %1515 = vst.msk [vmem:[#allocation2] sm:$0xff] %vm142_vm0, %v1512_v41 }
0x1a01   :  { %v1516_v42 = vld [vmem:[#allocation4] sm:$0xff] }
0x1a02   :  { %3003 = vmatmul.mubr.msk.f32.vlgmr.msra.gmra.mrb[12].mxu1 %vm142_vm0, %v1516_v42 }
0x1a03   :  { %3195 = vmatpush3.bf16.msra.mxu1 %v3934_v57  ;;  %3024 = vmatprep.mubr.msk.f32.mxu1 %vm3555_vm1, %v3556_v1  ;;  %v1603_v13 = vpop.permute.xlu1 %1602 }
0x1a04   :  { %3196 = vmatprep.subr.bf16.mxu1 %v3554_v0 }
0x1a07   :  { %3198 = vmatpush3.bf16.msra.mxu1 %v3937_v60 }
0x1a08   :  { %3205 = vmatprep.subr.bf16.mxu1 %v3554_v0 }
0x1ad5   :  { %v1588_v9 = vpop.f32.mrb[12].mxu1 }
0x1ad6   :  { %v1592_v44 = vadd.f32 %v1588_v9, %v1351_v43  ;;  %v3004_v45 = vpop.f32.mrb[13].mxu1 }
0x1ad8   :  { %v2696_v14 = vmul.f32 -1.442695, %v1592_v44 }
0x1ada   :  { %3326 = vpow2.f32 %v2696_v14 }
0x1adb   :  { %3328 = vtanh.f32 %v1592_v44 }
0x1ae4   :  { %v3327_v46 = vpop.eup %3326 }
0x1ae5   :  { %v1596_v15 = vadd.f32 1.0, %v3327_v46  ;;  %v3329_v47 = vpop.eup %3328 }
0x1ae7   :  { %3330 = vrcp.f32 %v1596_v15 }
0x1af1   :  { %v3331_v48 = vpop.eup %3330 }
0x1af2   :  { %v1600_v49 = vsel %vm120_vm2, %v3331_v48, %v3329_v47 }
0x1af3   :  { %1607 = vrot.lane.b32.xlu0 %v1600_v49, %s3557_s2  ;;  %v1605_v17 = vmul.f32 %v1603_v13, %v1600_v49 }
0x1b65   :  { %v1608_v50 = vpop.permute.xlu0 %1607 }
0x1b66   :  { %v1610_v51 = vmul.f32 %v1608_v50, %v1600_v49 }
0x1b68   :  { %1612 = vrot.lane.b32.xlu0 %v1610_v51, %s3557_s2 }
0x1bda   :  { %v1613_v20 = vpop.permute.xlu0 %1612 }
0x1bdb   :  { %v1615_v52 = vadd.f32 %v1613_v20, %v1605_v17 }
0x1bdd   :  { %3332 = vtanh.f32 %v1615_v52 }
0x1be7   :  { %v3333_v53 = vpop.eup %3332 }
0x1be8   :  { %1618 = vrot.lane.b32.xlu1 %v3333_v53, %s3557_s2 }
0x1bec   :  { %1623 = vrot.lane.b32.xlu1 %v1615_v52, %s3558_s27  ;;  %v1366_v52 = vadd.f32 %v3968_v6, %v3909_v16 }
0x1c5a   :  { %v1619_v54 = vpop.permute.xlu1 %1618 }
0x1c5b   :  { %v1621_v55 = vmul.f32 %v1619_v54, %v1600_v49 }
0x1c5d   :  { %1628 = vrot.lane.b32.xlu0 %v1621_v55, %s3559_s28 }
0x1c5e   :  { %v1624_v56 = vpop.permute.xlu1 %1623 }
0x1c5f   :  { %1626 = vst.msk [vmem:[#allocation5] sm:$0xff] %vm142_vm0, %v1624_v56 }
0x1c66   :  { %v1634_v58 = vld [vmem:[#allocation5] sm:$0xff] }
0x1c67   :  { %1719 = vrot.lane.b32.xlu1 %v1634_v58, %s3557_s2 }
0x1ccf   :  { %v1629_v59 = vpop.permute.xlu0 %1628 }
0x1cd0   :  { %1631 = vst.msk [vmem:[#allocation4] sm:$0xff] %vm142_vm0, %v1629_v59  ;;  %1632 = vst.msk [vmem:[#allocation2 + $0x8] sm:$0xff] %vm142_vm0, %v1629_v59 }
0x1cd7   :  { %v1633_v61 = vld [vmem:[#allocation4] sm:$0xff] }
0x1cd8   :  { %3014 = vmatmul.mubr.msk.f32.vlgmr.msra.gmra.mrb[22].mxu0 %vm142_vm0, %v1633_v61 }
0x1cd9   :  { %3201 = vmatpush3.bf16.msra.mxu0 %v3934_v57  ;;  %3035 = vmatprep.mubr.msk.f32.mxu0 %vm3555_vm1, %v3556_v1  ;;  %v1720_v22 = vpop.permute.xlu1 %1719 }
0x1cda   :  { %3202 = vmatprep.subr.bf16.mxu0 %v3554_v0 }
0x1cdd   :  { %3204 = vmatpush3.bf16.msra.mxu0 %v3937_v60 }
0x1cde   :  { %3211 = vmatprep.subr.bf16.mxu0 %v3554_v0 }
0x1dab   :  { %v1705_v63 = vpop.f32.mrb[22].mxu0 }
0x1dac   :  { %v1709_v2 = vadd.f32 %v1705_v63, %v1356_v62  ;;  %v3015_v3 = vpop.f32.mrb[23].mxu0 }
0x1dae   :  { %v2698_v4 = vmul.f32 -1.442695, %v1709_v2 }
0x1db0   :  { %3334 = vpow2.f32 %v2698_v4 }
0x1db1   :  { %3336 = vtanh.f32 %v1709_v2 }
0x1dba   :  { %v3335_v5 = vpop.eup %3334 }
0x1dbb   :  { %v1713_v7 = vadd.f32 1.0, %v3335_v5  ;;  %v3337_v11 = vpop.eup %3336 }
0x1dbd   :  { %3338 = vrcp.f32 %v1713_v7 }
0x1dc7   :  { %v3339_v12 = vpop.eup %3338 }
0x1dc8   :  { %v1717_v23 = vsel %vm120_vm2, %v3339_v12, %v3337_v11 }
0x1dc9   :  { %1724 = vrot.lane.b32.xlu0 %v1717_v23, %s3557_s2  ;;  %v1722_v26 = vmul.f32 %v1720_v22, %v1717_v23 }
0x1e3b   :  { %v1725_v24 = vpop.permute.xlu0 %1724 }
0x1e3c   :  { %v1727_v21 = vmul.f32 %v1725_v24, %v1717_v23 }
0x1e3e   :  { %1729 = vrot.lane.b32.xlu0 %v1727_v21, %s3557_s2 }
0x1eb0   :  { %v1730_v27 = vpop.permute.xlu0 %1729 }
0x1eb1   :  { %v1732_v29 = vadd.f32 %v1730_v27, %v1722_v26  ;;  %v1371_v27 = vadd.f32 %v3907_v25, %v3968_v6 }
0x1eb3   :  { %3340 = vtanh.f32 %v1732_v29 }
0x1ebd   :  { %v3341_v30 = vpop.eup %3340 }
0x1ebe   :  { %1735 = vrot.lane.b32.xlu1 %v3341_v30, %s3557_s2 }
0x1ec2   :  { %1740 = vrot.lane.b32.xlu1 %v1732_v29, %s3558_s27 }
0x1f30   :  { %v1736_v18 = vpop.permute.xlu1 %1735 }
0x1f31   :  { %v1738_v31 = vmul.f32 %v1736_v18, %v1717_v23 }
0x1f33   :  { %1745 = vrot.lane.b32.xlu0 %v1738_v31, %s3559_s28 }
0x1f34   :  { %v1741_v32 = vpop.permute.xlu1 %1740 }
0x1f35   :  { %1743 = vst.msk [vmem:[#allocation5] sm:$0xff] %vm142_vm0, %v1741_v32 }
0x1f3c   :  { %v1751_v33 = vld [vmem:[#allocation5] sm:$0xff] }
0x1f3d   :  { %1836 = vrot.lane.b32.xlu1 %v1751_v33, %s3557_s2 }
0x1fa5   :  { %v1746_v34 = vpop.permute.xlu0 %1745 }
0x1fa6   :  { %1748 = vst.msk [vmem:[#allocation4] sm:$0xff] %vm142_vm0, %v1746_v34  ;;  %1749 = vst.msk [vmem:[#allocation2 + $0x10] sm:$0xff] %vm142_vm0, %v1746_v34 }
0x1fad   :  { %v1750_v35 = vld [vmem:[#allocation4] sm:$0xff] }
0x1fae   :  { %3025 = vmatmul.mubr.msk.f32.vlgmr.msra.gmra.mrb[14].mxu1 %vm142_vm0, %v1750_v35 }
0x1faf   :  { %3207 = vmatpush3.bf16.msra.mxu1 %v3934_v57  ;;  %3046 = vmatprep.mubr.msk.f32.mxu1 %vm3555_vm1, %v3556_v1  ;;  %v1837_v19 = vpop.permute.xlu1 %1836 }
0x1fb0   :  { %3208 = vmatprep.subr.bf16.mxu1 %v3554_v0 }
0x1fb3   :  { %3210 = vmatpush3.bf16.msra.mxu1 %v3937_v60 }
0x1fb4   :  { %3217 = vmatprep.subr.bf16.mxu1 %v3554_v0 }
0x2081   :  { %v1822_v37 = vpop.f32.mrb[14].mxu1 }
0x2082   :  { %v1826_v38 = vadd.f32 %v1822_v37, %v1361_v36  ;;  %v3026_v39 = vpop.f32.mrb[15].mxu1 }
0x2083   :  { %v2343_v39 = vld [vmem:[#allocation14] sm:$0xff] }
0x2084   :  { %v2700_v40 = vmul.f32 -1.442695, %v1826_v38 }
0x2086   :  { %3342 = vpow2.f32 %v2700_v40  ;;  %v2344_v40 = vld [vmem:[#allocation14 + $0x8] sm:$0xff] }
0x2087   :  { %3344 = vtanh.f32 %v1826_v38 }
0x2090   :  { %v3343_v41 = vpop.eup %3342 }
0x2091   :  { %v1830_v42 = vadd.f32 1.0, %v3343_v41  ;;  %v3345_v43 = vpop.eup %3344  ;;  %v3223_v41 = vpack.c.bf16 %v2344_v40, %v2343_v39 }
0x2093   :  { %3346 = vrcp.f32 %v1830_v42 }
0x209d   :  { %v3347_v9 = vpop.eup %3346 }
0x209e   :  { %v1834_v44 = vsel %vm120_vm2, %v3347_v9, %v3345_v43 }
0x209f   :  { %1841 = vrot.lane.b32.xlu0 %v1834_v44, %s3557_s2  ;;  %v1839_v46 = vmul.f32 %v1837_v19, %v1834_v44  ;;  %v2346_v19 = vld [vmem:[#allocation14 + $0x18] sm:$0xff] }
0x2111   :  { %v1842_v45 = vpop.permute.xlu0 %1841 }
0x2112   :  { %v1844_v14 = vmul.f32 %v1842_v45, %v1834_v44 }
0x2114   :  { %1846 = vrot.lane.b32.xlu0 %v1844_v14, %s3557_s2  ;;  %v2345_v14 = vld [vmem:[#allocation14 + $0x10] sm:$0xff] }
0x2186   :  { %v1847_v15 = vpop.permute.xlu0 %1846 }
0x2187   :  { %v1849_v47 = vadd.f32 %v1847_v15, %v1839_v46  ;;  %v3227_v46 = vpack.c.bf16 %v2346_v19, %v2345_v14 }
0x2189   :  { %3348 = vtanh.f32 %v1849_v47 }
0x2193   :  { %v3349_v48 = vpop.eup %3348 }
0x2194   :  { %1852 = vrot.lane.b32.xlu1 %v3349_v48, %s3557_s2  ;;  %v2336_v48 = vld [vmem:[#allocation2 + $0x8] sm:$0xff] }
0x2198   :  { %1857 = vrot.lane.b32.xlu1 %v1849_v47, %s3558_s27  ;;  %v2335_v47 = vld [vmem:[#allocation2] sm:$0xff] }
0x2206   :  { %v1853_v49 = vpop.permute.xlu1 %1852 }
0x2207   :  { %v1855_v50 = vmul.f32 %v1853_v49, %v1834_v44  ;;  %v2337_v49 = vld [vmem:[#allocation2 + $0x10] sm:$0xff] }
0x2209   :  { %1862 = vrot.lane.b32.xlu0 %v1855_v50, %s3559_s28 }
0x220a   :  { %v1858_v51 = vpop.permute.xlu1 %1857 }
0x220b   :  { %1860 = vst.msk [vmem:[#allocation5] sm:$0xff] %vm142_vm0, %v1858_v51 }
0x2212   :  { %v1868_v13 = vld [vmem:[#allocation5] sm:$0xff] }
0x2213   :  { %1953 = vrot.lane.b32.xlu1 %v1868_v13, %s3557_s2 }
0x227b   :  { %v1863_v17 = vpop.permute.xlu0 %1862 }
0x227c   :  { %1865 = vst.msk [vmem:[#allocation4] sm:$0xff] %vm142_vm0, %v1863_v17  ;;  %1866 = vst.msk [vmem:[#allocation2 + $0x18] sm:$0xff] %vm142_vm0, %v1863_v17  ;;  %v1376_v17 = vadd.f32 %v3968_v6, %v3974_v10 }
0x2283   :  { %v1867_v20 = vld [vmem:[#allocation4] sm:$0xff]  ;;  %v2338_v50 = vld [vmem:[#allocation2 + $0x18] sm:$0xff] }
0x2284   :  { %3036 = vmatmul.mubr.msk.f32.vlgmr.msra.gmra.mrb[24].mxu0 %vm142_vm0, %v1867_v20 }
0x2285   :  { %3213 = vmatpush3.bf16.msra.mxu0 %v3934_v57  ;;  %3057 = vmatprep.mubr.msk.f32.mxu0 %vm3555_vm1, %v3556_v1  ;;  %v1954_v16 = vpop.permute.xlu1 %1953 }
0x2286   :  { %3214 = vmatprep.subr.bf16.mxu0 %v3554_v0 }
0x2289   :  { %3216 = vmatpush3.bf16.msra.mxu0 %v3937_v60 }
0x228a   :  { %3224 = vmatprep.subr.bf16.mxu0 %v3223_v41 }
0x2357   :  { %v1939_v53 = vpop.f32.mrb[24].mxu0 }
0x2358   :  { %v1943_v54 = vadd.f32 %v1939_v53, %v1366_v52  ;;  %v3037_v55 = vpop.f32.mrb[25].mxu0 }
0x235a   :  { %v2702_v56 = vmul.f32 -1.442695, %v1943_v54 }
0x235c   :  { %3350 = vpow2.f32 %v2702_v56 }
0x235d   :  { %3352 = vtanh.f32 %v1943_v54 }
0x2366   :  { %v3351_v58 = vpop.eup %3350 }
0x2367   :  { %v1947_v59 = vadd.f32 1.0, %v3351_v58  ;;  %v3353_v61 = vpop.eup %3352 }
0x2369   :  { %3354 = vrcp.f32 %v1947_v59 }
0x2373   :  { %v3355_v62 = vpop.eup %3354 }
0x2374   :  { %v1951_v63 = vsel %vm120_vm2, %v3355_v62, %v3353_v61 }
0x2375   :  { %1958 = vrot.lane.b32.xlu0 %v1951_v63, %s3557_s2  ;;  %v1956_v4 = vmul.f32 %v1954_v16, %v1951_v63 }
0x23e7   :  { %v1959_v2 = vpop.permute.xlu0 %1958 }
0x23e8   :  { %v1961_v3 = vmul.f32 %v1959_v2, %v1951_v63 }
0x23ea   :  { %1963 = vrot.lane.b32.xlu0 %v1961_v3, %s3557_s2 }
0x245c   :  { %v1964_v5 = vpop.permute.xlu0 %1963 }
0x245d   :  { %v1966_v7 = vadd.f32 %v1964_v5, %v1956_v4 }
0x245f   :  { %3356 = vtanh.f32 %v1966_v7 }
0x2469   :  { %v3357_v11 = vpop.eup %3356 }
0x246a   :  { %1969 = vrot.lane.b32.xlu1 %v3357_v11, %s3557_s2 }
0x246e   :  { %1974 = vrot.lane.b32.xlu1 %v1966_v7, %s3558_s27 }
0x24dc   :  { %v1970_v12 = vpop.permute.xlu1 %1969 }
0x24dd   :  { %v1972_v23 = vmul.f32 %v1970_v12, %v1951_v63 }
0x24df   :  { %1979 = vrot.lane.b32.xlu0 %v1972_v23, %s3559_s28 }
0x24e0   :  { %v1975_v24 = vpop.permute.xlu1 %1974 }
0x24e1   :  { %1977 = vst.msk [vmem:[#allocation5] sm:$0xff] %vm142_vm0, %v1975_v24 }
0x24e8   :  { %v1985_v21 = vld [vmem:[#allocation5] sm:$0xff] }
0x24e9   :  { %2070 = vrot.lane.b32.xlu1 %v1985_v21, %s3557_s2  ;;  %v2491_v21 = vld [vmem:[#allocation15] sm:$0xff] }
0x2551   :  { %v1980_v22 = vpop.permute.xlu0 %1979 }
0x2552   :  { %1982 = vst.msk [vmem:[#allocation4] sm:$0xff] %vm142_vm0, %v1980_v22  ;;  %1983 = vst.msk [vmem:[#allocation2 + $0x20] sm:$0xff] %vm142_vm0, %v1980_v22  ;;  %v2492_v22 = vld [vmem:[#allocation15 + $0x8] sm:$0xff] }
0x2559   :  { %v1984_v26 = vld [vmem:[#allocation4] sm:$0xff] }
0x255a   :  { %3047 = vmatmul.mubr.msk.f32.vlgmr.msra.gmra.mrb[16].mxu1 %vm142_vm0, %v1984_v26  ;;  %v2339_v51 = vld [vmem:[#allocation2 + $0x20] sm:$0xff]  ;;  %v3231_v26 = vpack.c.bf16 %v2492_v22, %v2491_v21 }
0x255b   :  { %3219 = vmatpush3.bf16.msra.mxu1 %v3934_v57  ;;  %3068 = vmatprep.mubr.msk.f32.mxu1 %vm3555_vm1, %v3556_v1  ;;  %v2071_v25 = vpop.permute.xlu1 %2070 }
0x255c   :  { %3220 = vmatprep.subr.bf16.mxu1 %v3554_v0 }
0x255f   :  { %3222 = vmatpush3.bf16.msra.mxu1 %v3937_v60 }
0x2560   :  { %3232 = vmatprep.subr.bf16.mxu1 %v3231_v26 }
0x262d   :  { %v2056_v29 = vpop.f32.mrb[16].mxu1 }
0x262e   :  { %v2060_v30 = vadd.f32 %v2056_v29, %v1371_v27  ;;  %v3048_v18 = vpop.f32.mrb[17].mxu1 }
0x2630   :  { %v2704_v31 = vmul.f32 -1.442695, %v2060_v30 }
0x2632   :  { %3358 = vpow2.f32 %v2704_v31 }
0x2633   :  { %3360 = vtanh.f32 %v2060_v30 }
0x263c   :  { %v3359_v32 = vpop.eup %3358 }
0x263d   :  { %v2064_v33 = vadd.f32 1.0, %v3359_v32  ;;  %v3361_v57 = vpop.eup %3360  ;;  %v4106_v32 = vld [vmem:[%s4166_s7] ss:$0 sm:$0xff] }
0x263f   :  { %3362 = vrcp.f32 %v2064_v33 }
0x2649   :  { %v3363_v34 = vpop.eup %3362 }
0x264a   :  { %v2068_v1 = vsel %vm120_vm2, %v3363_v34, %v3361_v57  ;;  %v2493_v57 = vld [vmem:[#allocation15 + $0x10] sm:$0xff]  ;;  %v2494_v34 = vld [vmem:[#allocation15 + $0x18] sm:$0xff] }
0x264b   :  { %2075 = vrot.lane.b32.xlu0 %v2068_v1, %s3557_s2  ;;  %v2073_v35 = vmul.f32 %v2071_v25, %v2068_v1 }
0x26bd   :  { %v2076_v0 = vpop.permute.xlu0 %2075 }
0x26be   :  { %v2078_v60 = vmul.f32 %v2076_v0, %v2068_v1 }
0x26c0   :  { %2080 = vrot.lane.b32.xlu0 %v2078_v60, %s3557_s2 }
0x2732   :  { %v2081_v36 = vpop.permute.xlu0 %2080 }
0x2733   :  { %v2083_v37 = vadd.f32 %v2081_v36, %v2073_v35 }
0x2735   :  { %3364 = vtanh.f32 %v2083_v37 }
0x273f   :  { %v3365_v38 = vpop.eup %3364 }
0x2740   :  { %2086 = vrot.lane.b32.xlu1 %v3365_v38, %s3557_s2 }
0x2744   :  { %2091 = vrot.lane.b32.xlu1 %v2083_v37, %s3558_s27 }
0x27b2   :  { %v2087_v42 = vpop.permute.xlu1 %2086 }
0x27b3   :  { %v2089_v43 = vmul.f32 %v2087_v42, %v2068_v1  ;;  %v3235_v1 = vpack.c.bf16 %v2494_v34, %v2493_v57 }
0x27b5   :  { %2096 = vrot.lane.b32.xlu0 %v2089_v43, %s3559_s28 }
0x27b6   :  { %v2092_v9 = vpop.permute.xlu1 %2091 }
0x27b7   :  { %2094 = vst.msk [vmem:[#allocation5] sm:$0xff] %vm142_vm0, %v2092_v9 }
0x27be   :  { %v2102_v44 = vld [vmem:[#allocation5] sm:$0xff] }
0x27bf   :  { %2187 = vrot.lane.b32.xlu1 %v2102_v44, %s3557_s2  ;;  %v1381_v44 = vadd.f32 %v3972_v8, %v3968_v6 }
0x2827   :  { %v2097_v45 = vpop.permute.xlu0 %2096 }
0x2828   :  { %2099 = vst.msk [vmem:[#allocation4] sm:$0xff] %vm142_vm0, %v2097_v45  ;;  %2100 = vst.msk [vmem:[#allocation2 + $0x28] sm:$0xff] %vm142_vm0, %v2097_v45 }
0x282f   :  { %v2101_v15 = vld [vmem:[#allocation4] sm:$0xff]  ;;  %v2340_v13 = vld [vmem:[#allocation2 + $0x28] sm:$0xff] }
0x2830   :  { %3058 = vmatmul.mubr.msk.f32.vlgmr.msra.gmra.mrb[26].mxu0 %vm142_vm0, %v2101_v15  ;;  %v2718_v15 = vld [vmem:[%s4168_s9] ss:$0 sm:$0xff]  ;;  %s3560_s9 = smov [#allocation17]  }
0x2831   :  { %3226 = vmatpush3.bf16.msra.mxu0 %v3223_v41  ;;  %3079 = vmatprep.mubr.msk.f32.mxu0 %vm142_vm0, %v2335_v47  ;;  %v2188_v7 = vpop.permute.xlu1 %2187  ;;  %s2644_s16 = sshll.u32 %s3560_s9, 4  ;;  %s2645_s16 = int_to_ptr.vmem [resolvable:$true] %s2644_s16 }
0x2832   :  { %3228 = vmatprep.subr.bf16.mxu0 %v3227_v46  ;;  %s3514_s12 = scalar_lea.vmem %s2645_s16, 1024  ;;  %p3519_p7 = scmp.lt.s32.totalorder %s2645_s16, %s2645_s16 }
0x2833   :  { %p3515_p6 = scmp.ne.s32.totalorder %s2645_s16, %s3514_s12  ;;  %p3520_p8 = scmp.lt.s32.totalorder %s3514_s12, %s3514_s12 }
0x2835   :  { %3230 = vmatpush3.bf16.msra.mxu0 %v3227_v46  ;;  %p3521_p9 = por %p3520_p8, %p3519_p7 }
0x2837   :  { %p3522_p10 = pnand %p3521_p9, %p3515_p6 }
0x2838   :  { %3080 = vmatmul.mubr.msk.f32.vlgmr.msra.gmra.mrb[28].mxu0 %vm142_vm0, %v2336_v48 }
0x2839   :  { %3082 = vmatprep.mubr.msk.f32.mxu0 %vm142_vm0, %v2337_v49 }
0x283c   :  { %3083 = vmatmul.mubr.msk.f32.gmra.mrb[30].mxu0 %vm142_vm0, %v2338_v50 }
0x283d   :  { %3085 = vmatprep.mubr.msk.f32.mxu0 %vm142_vm0, %v2339_v51 }
0x2840   :  { %3086 = vmatmul.mubr.msk.f32.gmra.mrb[32].mxu0 %vm142_vm0, %v2340_v13 }
0x2903   :  { %v2173_v20 = vpop.f32.mrb[26].mxu0 }
0x2904   :  { %v2177_v52 = vadd.f32 %v2173_v20, %v1376_v17  ;;  %v3059_v53 = vpop.f32.mrb[27].mxu0 }
0x2906   :  { %v2706_v54 = vmul.f32 -1.442695, %v2177_v52 }
0x2908   :  { %3366 = vpow2.f32 %v2706_v54 }
0x2909   :  { %3368 = vtanh.f32 %v2177_v52 }
0x290b   :  { %v3081_v55 = vpop.f32.mrb[28].mxu0 }
0x290c   :  { %v2444_v56 = vpop.f32.mrb[29].mxu0  ;;  %v2450_v35 = vadd.f32 %v3081_v55, %v4106_v32 }
0x290d   :  { %v2445_v33 = vadd.f32 %v4106_v32, %v2444_v56 }
0x290e   :  { %v2484_v37 = vmax.f32 %v2450_v35, 0.0 }
0x290f   :  { %v3084_v58 = vpop.f32.mrb[30].mxu0  ;;  %v2483_v0 = vmax.f32 %v2445_v33, 0.0 }
0x2910   :  { %v2454_v59 = vpop.f32.mrb[31].mxu0  ;;  %v2460_v38 = vadd.f32 %v3084_v58, %v4106_v32 }
0x2911   :  { %v2455_v36 = vadd.f32 %v4106_v32, %v2454_v59 }
0x2912   :  { %v3367_v61 = vpop.eup %3366  ;;  %v2486_v41 = vmax.f32 %v2460_v38, 0.0 }
0x2913   :  { %v2181_v62 = vadd.f32 1.0, %v3367_v61  ;;  %v3087_v63 = vpop.f32.mrb[32].mxu0  ;;  %v3369_v3 = vpop.eup %3368  ;;  %v2485_v39 = vmax.f32 %v2455_v36, 0.0 }
0x2914   :  { %v2464_v2 = vpop.f32.mrb[33].mxu0  ;;  %v2470_v42 = vadd.f32 %v3087_v63, %v4106_v32 }
0x2915   :  { %3370 = vrcp.f32 %v2181_v62  ;;  %v2465_v40 = vadd.f32 %v4106_v32, %v2464_v2 }
0x2916   :  { %v2488_v9 = vmax.f32 %v2470_v42, 0.0 }
0x2917   :  { %v2487_v43 = vmax.f32 %v2465_v40, 0.0 }
0x291f   :  { %v3371_v16 = vpop.eup %3370 }
0x2920   :  { %v2185_v10 = vsel %vm120_vm2, %v3371_v16, %v3369_v3 }
0x2921   :  { %2192 = vrot.lane.b32.xlu0 %v2185_v10, %s3557_s2  ;;  %v2190_v11 = vmul.f32 %v2188_v7, %v2185_v10 }
0x2993   :  { %v2193_v4 = vpop.permute.xlu0 %2192 }
0x2994   :  { %v2195_v5 = vmul.f32 %v2193_v4, %v2185_v10 }
0x2996   :  { %2197 = vrot.lane.b32.xlu0 %v2195_v5, %s3557_s2 }
0x2a08   :  { %v2198_v12 = vpop.permute.xlu0 %2197 }
0x2a09   :  { %v2200_v23 = vadd.f32 %v2198_v12, %v2190_v11 }
0x2a0b   :  { %3372 = vtanh.f32 %v2200_v23 }
0x2a15   :  { %v3373_v24 = vpop.eup %3372 }
0x2a16   :  { %2203 = vrot.lane.b32.xlu1 %v3373_v24, %s3557_s2 }
0x2a1a   :  { %2208 = vrot.lane.b32.xlu1 %v2200_v23, %s3558_s27 }
0x2a88   :  { %v2204_v27 = vpop.permute.xlu1 %2203 }
0x2a89   :  { %v2206_v29 = vmul.f32 %v2204_v27, %v2185_v10 }
0x2a8b   :  { %2213 = vrot.lane.b32.xlu0 %v2206_v29, %s3559_s28 }
0x2a8c   :  { %v2209_v30 = vpop.permute.xlu1 %2208 }
0x2a8d   :  { %2211 = vst.msk [vmem:[#allocation5] sm:$0xff] %vm142_vm0, %v2209_v30 }
0x2a94   :  { %v2219_v18 = vld [vmem:[#allocation5] sm:$0xff] }
0x2a95   :  { %2304 = vrot.lane.b32.xlu1 %v2219_v18, %s3557_s2 }
0x2afd   :  { %v2214_v31 = vpop.permute.xlu0 %2213 }
0x2afe   :  { %2216 = vst.msk [vmem:[#allocation4] sm:$0xff] %vm142_vm0, %v2214_v31  ;;  %2217 = vst.msk [vmem:[#allocation2 + $0x30] sm:$0xff] %vm142_vm0, %v2214_v31 }
0x2b05   :  { %v2218_v60 = vld [vmem:[#allocation4] sm:$0xff]  ;;  %v2341_v25 = vld [vmem:[#allocation2 + $0x30] sm:$0xff] }
0x2b06   :  { %3069 = vmatmul.mubr.msk.f32.vlgmr.msra.gmra.mrb[18].mxu1 %vm142_vm0, %v2218_v60  ;;  %3088 = vmatprep.mubr.msk.f32.mxu0 %vm142_vm0, %v2341_v25 }
0x2b07   :  { %3234 = vmatpush3.bf16.msra.mxu1 %v3231_v26  ;;  %3099 = vmatprep.mubr.msk.f32.mxu1 %vm142_vm0, %v2483_v0  ;;  %v2305_v63 = vpop.permute.xlu1 %2304 }
0x2b08   :  { %3236 = vmatprep.subr.bf16.mxu1 %v3235_v1 }
0x2b0b   :  { %3238 = vmatpush3.bf16.msra.mxu1 %v3235_v1 }
0x2b0e   :  { %3100 = vmatmul.mubr.msk.f32.vlgmr.msra.gmra.mrb[20].mxu1 %vm142_vm0, %v2484_v37 }
0x2b0f   :  { %3102 = vmatprep.mubr.msk.f32.mxu1 %vm142_vm0, %v2485_v39 }
0x2b12   :  { %3103 = vmatmul.mubr.msk.f32.gmra.mrb[22].mxu1 %vm142_vm0, %v2486_v41 }
0x2b13   :  { %3105 = vmatprep.mubr.msk.f32.mxu1 %vm142_vm0, %v2487_v43 }
0x2b16   :  { %3106 = vmatmul.mubr.msk.f32.gmra.mrb[24].mxu1 %vm142_vm0, %v2488_v9 }
0x2bd9   :  { %v2290_v45 = vpop.f32.mrb[18].mxu1 }
0x2bda   :  { %v2294_v14 = vadd.f32 %v2290_v45, %v1381_v44  ;;  %v3070_v19 = vpop.f32.mrb[19].mxu1 }
0x2bdc   :  { %v2708_v46 = vmul.f32 -1.442695, %v2294_v14 }
0x2bde   :  { %3374 = vpow2.f32 %v2708_v46 }
0x2bdf   :  { %3376 = vtanh.f32 %v2294_v14 }
0x2be1   :  { %v3101_v47 = vpop.f32.mrb[20].mxu1 }
0x2be2   :  { %v2598_v48 = vadd.f32 %v3101_v47, %v2718_v15  ;;  %v2592_v49 = vpop.f32.mrb[21].mxu1 }
0x2be3   :  { %v2593_v50 = vadd.f32 %v2718_v15, %v2592_v49 }
0x2be4   :  { %2632 = vst [vmem:[#allocation17 + $0x8] sm:$0xff] %v2598_v48 }
0x2be5   :  { %2631 = vst [vmem:[#allocation17] sm:$0xff] %v2593_v50  ;;  %v3104_v51 = vpop.f32.mrb[22].mxu1 }
0x2be6   :  { %v2608_v13 = vadd.f32 %v3104_v51, %v2718_v15  ;;  %v2602_v17 = vpop.f32.mrb[23].mxu1 }
0x2be7   :  { %v2603_v20 = vadd.f32 %v2718_v15, %v2602_v17 }
0x2be8   :  { %v3375_v6 = vpop.eup %3374  ;;  %2634 = vst [vmem:[#allocation17 + $0x18] sm:$0xff] %v2608_v13 }
0x2be9   :  { %v2298_v8 = vadd.f32 1.0, %v3375_v6  ;;  %2633 = vst [vmem:[#allocation17 + $0x10] sm:$0xff] %v2603_v20  ;;  %v3107_v52 = vpop.f32.mrb[24].mxu1  ;;  %v3377_v56 = vpop.eup %3376 }
0x2bea   :  { %v2618_v53 = vadd.f32 %v3107_v52, %v2718_v15  ;;  %v2612_v54 = vpop.f32.mrb[25].mxu1 }
0x2beb   :  { %3378 = vrcp.f32 %v2298_v8  ;;  %v2613_v55 = vadd.f32 %v2718_v15, %v2612_v54 }
0x2bec   :  { %2636 = vst [vmem:[#allocation17 + $0x28] sm:$0xff] %v2618_v53 }
0x2bed   :  { %2635 = vst [vmem:[#allocation17 + $0x20] sm:$0xff] %v2613_v55 }
0x2bf5   :  { %v3379_v58 = vpop.eup %3378 }
0x2bf6   :  { %v2302_v59 = vsel %vm120_vm2, %v3379_v58, %v3377_v56 }
0x2bf7   :  { %2309 = vrot.lane.b32.xlu0 %v2302_v59, %s3557_s2  ;;  %v2307_v2 = vmul.f32 %v2305_v63, %v2302_v59 }
0x2c69   :  { %v2310_v61 = vpop.permute.xlu0 %2309 }
0x2c6a   :  { %v2312_v62 = vmul.f32 %v2310_v61, %v2302_v59 }
0x2c6c   :  { %2314 = vrot.lane.b32.xlu0 %v2312_v62, %s3557_s2 }
0x2cde   :  { %v2315_v3 = vpop.permute.xlu0 %2314 }
0x2cdf   :  { %v2317_v16 = vadd.f32 %v2315_v3, %v2307_v2 }
0x2ce1   :  { %3380 = vtanh.f32 %v2317_v16 }
0x2ceb   :  { %v3381_v10 = vpop.eup %3380 }
0x2cec   :  { %2320 = vrot.lane.b32.xlu1 %v3381_v10, %s3557_s2 }
0x2cf0   :  { %2325 = vrot.lane.b32.xlu1 %v2317_v16, %s3558_s27 }
0x2d5e   :  { %v2321_v4 = vpop.permute.xlu1 %2320 }
0x2d5f   :  { %v2323_v5 = vmul.f32 %v2321_v4, %v2302_v59 }
0x2d61   :  { %2330 = vrot.lane.b32.xlu0 %v2323_v5, %s3559_s28 }
0x2d62   :  { %v2326_v28 = vpop.permute.xlu1 %2325 }
0x2d63   :  { %2328 = vst.msk [vmem:[#allocation5] sm:$0xff] %vm142_vm0, %v2326_v28 }
0x2dd3   :  { %v2331_v7 = vpop.permute.xlu0 %2330 }
0x2dd4   :  { %2333 = vst.msk [vmem:[#allocation4] sm:$0xff] %vm142_vm0, %v2331_v7  ;;  %2334 = vst.msk [vmem:[#allocation2 + $0x38] sm:$0xff] %vm142_vm0, %v2331_v7 }
0x2ddb   :  { %v2342_v11 = vld [vmem:[#allocation2 + $0x38] sm:$0xff] }
0x2ddc   :  { %3089 = vmatmul.mubr.msk.f32.gmra.mrb[34].mxu0 %vm142_vm0, %v2342_v11 }
0x2eaf   :  { %v3090_v12 = vpop.f32.mrb[34].mxu0 }
0x2eb0   :  { %v2480_v23 = vadd.f32 %v3090_v12, %v4106_v32  ;;  %v2474_v24 = vpop.f32.mrb[35].mxu0 }
0x2eb1   :  { %v2475_v21 = vadd.f32 %v4106_v32, %v2474_v24 }
0x2eb2   :  { %v2490_v26 = vmax.f32 %v2480_v23, 0.0 }
0x2eb3   :  { %v2489_v22 = vmax.f32 %v2475_v21, 0.0 }
0x2eb5   :  { %3108 = vmatprep.mubr.msk.f32.mxu1 %vm142_vm0, %v2489_v22 }
0x2eb6   :  { %3109 = vmatmul.mubr.msk.f32.gmra.mrb[26].mxu1 %vm142_vm0, %v2490_v26 }
0x2f89   :  { %v3110_v27 = vpop.f32.mrb[26].mxu1 }
0x2f8a   :  { %v2628_v29 = vadd.f32 %v3110_v27, %v2718_v15  ;;  %v2622_v30 = vpop.f32.mrb[27].mxu1 }
0x2f8b   :  { %v2623_v18 = vadd.f32 %v2718_v15, %v2622_v30 }
0x2f8c   :  { %2638 = vst [vmem:[#allocation17 + $0x38] sm:$0xff] %v2628_v29 }
0x2f8d   :  { %2637 = vst [vmem:[#allocation17 + $0x30] sm:$0xff] %v2623_v18 }
0x2f8e   :  { %3525 = shalt.err (!%p3522_p10)
}
0x2f8f   :  { %s3526_s22 = scalar_lea.hbm %s4169_s10, 1024 }
0x2f90   :  { %p3527_p11 = scmp.ne.s32.totalorder %s4169_s10, %s3526_s22  ;;  %p3530_p12 = scmp.lt.u32.totalorder %s3526_s22, %s4169_s10 }
0x2f92   :  { %p3532_p13 = pnand %p3530_p12, %p3527_p11 }
0x2f94   :  { %3535 = shalt.err (!%p3532_p13)
}
0x2f95   :  { %2650 = dma.vmem_to_hbm [thread:$0]  %s2645_s16, 1024, %s4169_s10, [#allocation8], %s3548_s25, %s3548_s25, %s3549_s26  }
0x2f96   :  { %3544 = dma.done.wait [#allocation8], 1024  }
0x2f97   :  { %3545 = vsyncadd [#allocation8], 4294966272 }
0x2f98   :  { %2654 = vsyncpa [#allocation7], 1 }
0x2f99   :  { %2655 = vsyncpa [#allocation10], 1 }
0x2f9a   :  { %2656 = vsyncpa [#allocation13], 1 }
0x2f9b   :  { %2657 = vsyncpa [#allocation16], 1 }
0x2f9c   :  { %2658 = vsyncpa [#allocation8], 1 }

</bundles_post_ra>
